<compile_context>
chip_gen: v7x
topology: tpu7x:2x2x1
jax: 0.10.0
libtpu: 0.0.40
codegen_flags: <defaults>
</compile_context>

<pallas_src>
import jax
import jax.numpy as jnp
from jax.experimental import pallas as pl
from jax.experimental.pallas import tpu as pltpu


HP = 128      # per-gate lane-aligned width (H=64 padded)
VP = 128      # vocab padded to a full lane tile
F1P = 128     # fc1 width padded 32 -> 128
OP = 128      # fc2 output width padded 3 -> 128

# Padded gate-column order is [i, f, o, g] (PyTorch source order is i, f, g, o)
# so sigmoid covers lanes [0:3*HP) and tanh covers [3*HP:4*HP).
_GATE_PERM = (0, 1, 3, 2)   # dest slot k takes source gate _GATE_PERM[k]


# ----------------------------- fused kernel ---------------------------------
def _make_fused_kernel(T, Bp, Hp, Vp):
    def kernel(tok_ref, emb_ref, wihf_ref, whhf_ref, bf_ref, wihb_ref, bb_ref,
               w1f_ref, w1b_ref, b1_ref, w2_ref, b2_ref, out_ref, ig_ref):
        # ---- in-kernel embedding lookup: one-hot @ table on the MXU ----
        tok = tok_ref[...]                                          # (T*Bp, 1) i32
        vocab_iota = jax.lax.broadcasted_iota(jnp.int32, (T * Bp, Vp), 1)
        onehot = (vocab_iota == tok).astype(jnp.float32)            # (T*Bp, Vp)
        x = jnp.dot(onehot, emb_ref[...],
                    preferred_element_type=jnp.float32)             # (T*Bp, E)

        # ---- hoisted non-recurrent input-gate matmul for ALL T steps ----
        # Parked in VMEM scratch so it is not held live across the recurrence.
        ig_ref[...] = (jnp.dot(x, wihf_ref[...],
                               preferred_element_type=jnp.float32)
                       + bf_ref[...])                                # (T*Bp, 4*Hp)

        # ---- reverse direction (computed up-front so x dies before the loop) ----
        # lstm_out[:, -1, H:] of a bidirectional LSTM is one reverse step from
        # zero state on x at t = T-1.
        gb = (jnp.dot(x[(T - 1) * Bp:, :], wihb_ref[...],
                      preferred_element_type=jnp.float32) + bb_ref[...])
        sgb = jax.nn.sigmoid(gb[:, :3 * Hp])                         # i, f, o
        ggb = jnp.tanh(gb[:, 3 * Hp:])                               # g
        cb = sgb[:, :Hp] * ggb                                       # i*g (f*c0 = 0)
        hb = sgb[:, 2 * Hp:3 * Hp] * jnp.tanh(cb)                    # (Bp, Hp)

        # ---- forward recurrence: per-step Ref slices, half-width EUP ----
        def step(t, carry):
            h, c = carry
            row = pl.multiple_of(t * Bp, Bp)
            g = ig_ref[pl.ds(row, Bp), :] + jnp.dot(
                h, whhf_ref[...], preferred_element_type=jnp.float32)  # (Bp, 4*Hp)
            sg = jax.nn.sigmoid(g[:, :3 * Hp])                       # i, f, o only
            gg = jnp.tanh(g[:, 3 * Hp:])                             # g only
            c = sg[:, Hp:2 * Hp] * c + sg[:, :Hp] * gg
            h = sg[:, 2 * Hp:3 * Hp] * jnp.tanh(c)
            return (h, c)
            # padded lanes [H:Hp]: preact=0 -> c = 0.5*0 + 0.5*tanh(0) = 0, h = 0

        h0 = jnp.zeros((Bp, Hp), jnp.float32)
        c0 = jnp.zeros((Bp, Hp), jnp.float32)
        h, _ = jax.lax.fori_loop(0, T, step, (h0, c0), unroll=True)

        # ---- classifier head, all full-lane vregs ----
        # fc1([h_fwd || h_bwd]) expressed as two matmuls against split halves.
        z1 = (jnp.dot(h, w1f_ref[...], preferred_element_type=jnp.float32)
              + jnp.dot(hb, w1b_ref[...], preferred_element_type=jnp.float32)
              + b1_ref[...])                                         # (Bp, F1P)
        z1 = jnp.maximum(z1, 0.0)                                    # relu
        # Single lane-dense store (Bp, OP).
        out_ref[...] = (jnp.dot(z1, w2_ref[...],
                                preferred_element_type=jnp.float32)
                        + b2_ref[...])

    return kernel


# --------------------------- weight preparation ------------------------------
def _pad_gate_cols(w_t, H, Hp):
    """(rows, 4H) in PyTorch i,f,g,o order -> (rows, 4*Hp) in i,f,o,g order,
    gate k's H real columns at lane offset k*Hp (rest zero)."""
    rows = w_t.shape[0]
    out = jnp.zeros((rows, 4 * Hp), w_t.dtype)
    for k, src in enumerate(_GATE_PERM):
        out = out.at[:, k * Hp:k * Hp + H].set(w_t[:, src * H:(src + 1) * H])
    return out


def prepare_params(params):
    """One-time padding/layout of all weights (hoisted out of forward())."""
    H = params['w_hh_f'].shape[1]
    vocab, E = params['emb'].shape
    out_dim = params['w2'].shape[0]
    F1 = params['w1'].shape[0]

    q = {}
    q['emb'] = jnp.pad(params['emb'], ((0, VP - vocab), (0, 0)))                 # (VP, E)
    q['wihf'] = _pad_gate_cols(params['w_ih_f'].T, H, HP)                        # (E, 4HP)
    q['whhf'] = jnp.pad(_pad_gate_cols(params['w_hh_f'].T, H, HP),
                        ((0, HP - H), (0, 0)))                                   # (HP, 4HP)
    q['bf'] = _pad_gate_cols((params['b_ih_f'] + params['b_hh_f']).reshape(1, -1), H, HP)
    q['wihb'] = _pad_gate_cols(params['w_ih_b'].T, H, HP)                        # (E, 4HP)
    q['bb'] = _pad_gate_cols((params['b_ih_b'] + params['b_hh_b']).reshape(1, -1), H, HP)
    w1 = params['w1']                                                            # (F1, 2H)
    q['w1f'] = jnp.pad(w1[:, :H].T, ((0, HP - H), (0, F1P - F1)))                # (HP, F1P)
    q['w1b'] = jnp.pad(w1[:, H:].T, ((0, HP - H), (0, F1P - F1)))                # (HP, F1P)
    q['b1'] = jnp.pad(params['b1'].reshape(1, -1), ((0, 0), (0, F1P - F1)))      # (1, F1P)
    q['w2'] = jnp.pad(params['w2'].T, ((0, F1P - F1), (0, OP - out_dim)))        # (F1P, OP)
    q['b2'] = jnp.pad(params['b2'].reshape(1, -1), ((0, 0), (0, OP - out_dim)))  # (1, OP)
    return q


# ------------------------------ parameters ----------------------------------
def init_params(key, vocab, E=128, H=64, out_dim=3):
    keys = jax.random.split(key, 12)
    s = 1.0 / jnp.sqrt(jnp.float32(H))

    def u(k, shape):
        return jax.random.uniform(k, shape, jnp.float32, -s, s)

    p = {}
    p['emb'] = jax.random.normal(keys[0], (vocab, E), jnp.float32) * 0.1
    p['w_ih_f'] = u(keys[1], (4 * H, E))
    p['w_hh_f'] = u(keys[2], (4 * H, H))
    p['b_ih_f'] = u(keys[3], (4 * H,))
    p['b_hh_f'] = u(keys[4], (4 * H,))
    p['w_ih_b'] = u(keys[5], (4 * H, E))
    p['w_hh_b'] = u(keys[6], (4 * H, H))
    p['b_ih_b'] = u(keys[7], (4 * H,))
    p['b_hh_b'] = u(keys[8], (4 * H,))
    p['w1'] = u(keys[9], (32, 2 * H))
    p['b1'] = jnp.zeros((32,), jnp.float32)
    p['w2'] = u(keys[10], (out_dim, 32))
    p['b2'] = jnp.zeros((out_dim,), jnp.float32)
    return p


# ------------------------------- forward ------------------------------------
def forward(prepped, x_tokens, out_dim=3):
    B, T = x_tokens.shape
    Bp = max(8, ((B + 7) // 8) * 8)        # batch padded to a full sublane tile

    # Only remaining wrapper glue: time-major, batch-padded token layout
    # (a few tiny int32 ops on B*T values; the embedding gather is in-kernel).
    tok = jnp.pad(x_tokens.T.astype(jnp.int32), ((0, 0), (0, Bp - B)))
    tok = tok.reshape(T * Bp, 1)

    # nn.Dropout(0.3) -> identity at inference.
    # TODO(synk): training-mode stochastic dropout not implemented.

    kernel = _make_fused_kernel(T, Bp, HP, VP)
    vmem = pl.BlockSpec(memory_space=pltpu.MemorySpace.VMEM)
    out_pad = pl.pallas_call(
        kernel,
        out_shape=jax.ShapeDtypeStruct((Bp, OP), jnp.float32),
        in_specs=[vmem] * 12,
        out_specs=vmem,
        scratch_shapes=[pltpu.VMEM((T * Bp, 4 * HP), jnp.float32)],
    )(tok, prepped['emb'], prepped['wihf'], prepped['whhf'], prepped['bf'],
      prepped['wihb'], prepped['bb'], prepped['w1f'], prepped['w1b'],
      prepped['b1'], prepped['w2'], prepped['b2'])

    return out_pad[:B, :out_dim]


# ------------------------ pure-JAX reference (check) -------------------------
def forward_ref(params, x_tokens):
    emb = params['emb'][x_tokens]
    B, T, E = emb.shape
    H = params['w_hh_f'].shape[1]

    def run(x_seq, w_ih, w_hh, b_ih, b_hh):
        def step(carry, x_t):
            h, c = carry
            gates = x_t @ w_ih.T + h @ w_hh.T + b_ih + b_hh
            i = jax.nn.sigmoid(gates[:, :H])
            f = jax.nn.sigmoid(gates[:, H:2 * H])
            g = jnp.tanh(gates[:, 2 * H:3 * H])
            o = jax.nn.sigmoid(gates[:, 3 * H:])
            c = f * c + i * g
            h = o * jnp.tanh(c)
            return (h, c), h
        init = (jnp.zeros((B, H), jnp.float32), jnp.zeros((B, H), jnp.float32))
        _, hs = jax.lax.scan(step, init, x_seq)
        return hs  # (T, B, H)

    x_seq = jnp.transpose(emb, (1, 0, 2))
    hs_f = run(x_seq, params['w_ih_f'], params['w_hh_f'], params['b_ih_f'], params['b_hh_f'])
    hs_b = run(x_seq[::-1], params['w_ih_b'], params['w_hh_b'], params['b_ih_b'], params['b_hh_b'])[::-1]
    last = jnp.concatenate([hs_f[-1], hs_b[-1]], axis=-1)   # lstm_out[:, -1, :]
    h1 = jax.nn.relu(last @ params['w1'].T + params['b1'])
    return h1 @ params['w2'].T + params['b2']


if __name__ == "__main__":
    B, T = 2, 8
    vocab = 32          # input_dim
    key = jax.random.PRNGKey(0)
    k_p, k_x = jax.random.split(key)
    params = init_params(k_p, vocab, E=128, H=64, out_dim=3)
    x_tokens = jax.random.randint(k_x, (B, T), 0, vocab, dtype=jnp.int32)

    # One-time weight preparation (hoisted out of forward()).
    prepped = jax.tree_util.tree_map(jax.block_until_ready, prepare_params(params))

    fwd = jax.jit(forward, static_argnames=("out_dim",))
    out = fwd(prepped, x_tokens)
    out = jax.block_until_ready(out)

    ref = forward_ref(params, x_tokens)
    assert out.shape == (B, 3), out.shape
    assert jnp.allclose(out, ref, atol=1e-4, rtol=1e-4), (out, ref)
    print("KERNEL_OK")
</pallas_src>

<mosaic_0001>
module attributes {stable_mosaic.version = 11 : i64} {
  func.func @kernel(%arg0: memref<64x1xi32, #tpu.memory_space<vmem>>, %arg1: memref<128x128xf32, #tpu.memory_space<vmem>>, %arg2: memref<128x512xf32, #tpu.memory_space<vmem>>, %arg3: memref<128x512xf32, #tpu.memory_space<vmem>>, %arg4: memref<1x512xf32, #tpu.memory_space<vmem>>, %arg5: memref<128x512xf32, #tpu.memory_space<vmem>>, %arg6: memref<1x512xf32, #tpu.memory_space<vmem>>, %arg7: memref<128x128xf32, #tpu.memory_space<vmem>>, %arg8: memref<128x128xf32, #tpu.memory_space<vmem>>, %arg9: memref<1x128xf32, #tpu.memory_space<vmem>>, %arg10: memref<128x128xf32, #tpu.memory_space<vmem>>, %arg11: memref<1x128xf32, #tpu.memory_space<vmem>>, %arg12: memref<8x128xf32, #tpu.memory_space<vmem>>, %arg13: memref<64x512xf32, #tpu.memory_space<vmem>>) attributes {dimension_semantics = [], scalar_prefetch = 0 : i64, scratch_operands = 1 : i64, tpu.core_type = #tpu.core_type<tc>} {
    %c0 = arith.constant 0 : index
    %c0_0 = arith.constant 0 : index
    %0 = vector.load %arg0[%c0, %c0_0] : memref<64x1xi32, #tpu.memory_space<vmem>>, vector<64x1xi32>
    %1 = tpu.iota {dimensions = array<i32: 1>} : vector<64x128xi32>
    %2 = vector.broadcast %0 : vector<64x1xi32> to vector<64x128xi32>
    %3 = arith.cmpi eq, %1, %2 : vector<64x128xi32>
    %4 = arith.extui %3 : vector<64x128xi1> to vector<64x128xi32>
    %5 = arith.sitofp %4 : vector<64x128xi32> to vector<64x128xf32>
    %c0_1 = arith.constant 0 : index
    %c0_2 = arith.constant 0 : index
    %6 = vector.load %arg1[%c0_1, %c0_2] : memref<128x128xf32, #tpu.memory_space<vmem>>, vector<128x128xf32>
    %cst = arith.constant dense<0.000000e+00> : vector<64x128xf32>
    %7 = tpu.matmul %5, %6, %cst {dimension_numbers = #tpu.dot_dimension_numbers<[1], [0], [0], [1], [0, 0, 1, 1], [], []>} : vector<64x128xf32>, vector<128x128xf32>, vector<64x128xf32> -> vector<64x128xf32>
    %c0_3 = arith.constant 0 : index
    %c0_4 = arith.constant 0 : index
    %8 = vector.load %arg2[%c0_3, %c0_4] : memref<128x512xf32, #tpu.memory_space<vmem>>, vector<128x512xf32>
    %cst_5 = arith.constant dense<0.000000e+00> : vector<64x512xf32>
    %9 = tpu.matmul %7, %8, %cst_5 {dimension_numbers = #tpu.dot_dimension_numbers<[1], [0], [0], [1], [0, 0, 1, 1], [], []>} : vector<64x128xf32>, vector<128x512xf32>, vector<64x512xf32> -> vector<64x512xf32>
    %c0_6 = arith.constant 0 : index
    %c0_7 = arith.constant 0 : index
    %10 = vector.load %arg4[%c0_6, %c0_7] : memref<1x512xf32, #tpu.memory_space<vmem>>, vector<1x512xf32>
    %11 = vector.broadcast %10 : vector<1x512xf32> to vector<64x512xf32>
    %12 = arith.addf %9, %11 : vector<64x512xf32>
    %c0_8 = arith.constant 0 : index
    %c0_9 = arith.constant 0 : index
    %13 = vector.load %arg13[%c0_8, %c0_9] : memref<64x512xf32, #tpu.memory_space<vmem>>, vector<64x512xf32>
    tpu.vector_store %arg13[%c0_8, %c0_9], %12 {strides = array<i32>} : memref<64x512xf32, #tpu.memory_space<vmem>>, vector<64x512xf32>,
    %14 = vector.extract_strided_slice %7 {offsets = [56, 0], sizes = [8, 128], strides = [1, 1]} : vector<64x128xf32> to vector<8x128xf32>
    %c0_10 = arith.constant 0 : index
    %c0_11 = arith.constant 0 : index
    %15 = vector.load %arg5[%c0_10, %c0_11] : memref<128x512xf32, #tpu.memory_space<vmem>>, vector<128x512xf32>
    %cst_12 = arith.constant dense<0.000000e+00> : vector<8x512xf32>
    %16 = tpu.matmul %14, %15, %cst_12 {dimension_numbers = #tpu.dot_dimension_numbers<[1], [0], [0], [1], [0, 0, 1, 1], [], []>} : vector<8x128xf32>, vector<128x512xf32>, vector<8x512xf32> -> vector<8x512xf32>
    %c0_13 = arith.constant 0 : index
    %c0_14 = arith.constant 0 : index
    %17 = vector.load %arg6[%c0_13, %c0_14] : memref<1x512xf32, #tpu.memory_space<vmem>>, vector<1x512xf32>
    %18 = vector.broadcast %17 : vector<1x512xf32> to vector<8x512xf32>
    %19 = arith.addf %16, %18 : vector<8x512xf32>
    %20 = vector.extract_strided_slice %19 {offsets = [0, 0], sizes = [8, 384], strides = [1, 1]} : vector<8x512xf32> to vector<8x384xf32>
    %21 = arith.negf %20 : vector<8x384xf32>
    %22 = math.exp %21 : vector<8x384xf32>
    %cst_15 = arith.constant 1.000000e+00 : f32
    %23 = vector.broadcast %cst_15 : f32 to vector<8x384xf32>
    %24 = arith.addf %23, %22 : vector<8x384xf32>
    %25 = arith.divf %23, %24 : vector<8x384xf32>
    %26 = vector.extract_strided_slice %19 {offsets = [0, 384], sizes = [8, 128], strides = [1, 1]} : vector<8x512xf32> to vector<8x128xf32>
    %27 = math.tanh %26 : vector<8x128xf32>
    %28 = vector.extract_strided_slice %25 {offsets = [0, 0], sizes = [8, 128], strides = [1, 1]} : vector<8x384xf32> to vector<8x128xf32>
    %29 = arith.mulf %28, %27 : vector<8x128xf32>
    %30 = vector.extract_strided_slice %25 {offsets = [0, 256], sizes = [8, 128], strides = [1, 1]} : vector<8x384xf32> to vector<8x128xf32>
    %31 = math.tanh %29 : vector<8x128xf32>
    %32 = arith.mulf %30, %31 : vector<8x128xf32>
    %cst_16 = arith.constant 0.000000e+00 : f32
    %33 = vector.broadcast %cst_16 : f32 to vector<8x128xf32>
    %cst_17 = arith.constant 0.000000e+00 : f32
    %34 = vector.broadcast %cst_17 : f32 to vector<8x128xf32>
    %c0_i32 = arith.constant 0 : i32
    %c8_i32 = arith.constant 8 : i32
    %35 = arith.muli %c0_i32, %c8_i32 : i32
    %36 = tpu.assume_multiple %35, 8 : i32
    %37 = arith.index_cast %36 : i32 to index
    %c0_18 = arith.constant 0 : index
    %38 = vector.load %arg13[%37, %c0_18] : memref<64x512xf32, #tpu.memory_space<vmem>>, vector<8x512xf32>
    %c0_19 = arith.constant 0 : index
    %c0_20 = arith.constant 0 : index
    %39 = vector.load %arg3[%c0_19, %c0_20] : memref<128x512xf32, #tpu.memory_space<vmem>>, vector<128x512xf32>
    %cst_21 = arith.constant dense<0.000000e+00> : vector<8x512xf32>
    %40 = tpu.matmul %33, %39, %cst_21 {dimension_numbers = #tpu.dot_dimension_numbers<[1], [0], [0], [1], [0, 0, 1, 1], [], []>} : vector<8x128xf32>, vector<128x512xf32>, vector<8x512xf32> -> vector<8x512xf32>
    %41 = arith.addf %38, %40 : vector<8x512xf32>
    %42 = vector.extract_strided_slice %41 {offsets = [0, 0], sizes = [8, 384], strides = [1, 1]} : vector<8x512xf32> to vector<8x384xf32>
    %43 = arith.negf %42 : vector<8x384xf32>
    %44 = math.exp %43 : vector<8x384xf32>
    %cst_22 = arith.constant 1.000000e+00 : f32
    %45 = vector.broadcast %cst_22 : f32 to vector<8x384xf32>
    %46 = arith.addf %45, %44 : vector<8x384xf32>
    %47 = arith.divf %45, %46 : vector<8x384xf32>
    %48 = vector.extract_strided_slice %41 {offsets = [0, 384], sizes = [8, 128], strides = [1, 1]} : vector<8x512xf32> to vector<8x128xf32>
    %49 = math.tanh %48 : vector<8x128xf32>
    %50 = vector.extract_strided_slice %47 {offsets = [0, 128], sizes = [8, 128], strides = [1, 1]} : vector<8x384xf32> to vector<8x128xf32>
    %51 = arith.mulf %50, %34 : vector<8x128xf32>
    %52 = vector.extract_strided_slice %47 {offsets = [0, 0], sizes = [8, 128], strides = [1, 1]} : vector<8x384xf32> to vector<8x128xf32>
    %53 = arith.mulf %52, %49 : vector<8x128xf32>
    %54 = arith.addf %51, %53 : vector<8x128xf32>
    %55 = vector.extract_strided_slice %47 {offsets = [0, 256], sizes = [8, 128], strides = [1, 1]} : vector<8x384xf32> to vector<8x128xf32>
    %56 = math.tanh %54 : vector<8x128xf32>
    %57 = arith.mulf %55, %56 : vector<8x128xf32>
    %c1_i32 = arith.constant 1 : i32
    %c8_i32_23 = arith.constant 8 : i32
    %58 = arith.muli %c1_i32, %c8_i32_23 : i32
    %59 = tpu.assume_multiple %58, 8 : i32
    %60 = arith.index_cast %59 : i32 to index
    %c0_24 = arith.constant 0 : index
    %61 = vector.load %arg13[%60, %c0_24] : memref<64x512xf32, #tpu.memory_space<vmem>>, vector<8x512xf32>
    %c0_25 = arith.constant 0 : index
    %c0_26 = arith.constant 0 : index
    %62 = vector.load %arg3[%c0_25, %c0_26] : memref<128x512xf32, #tpu.memory_space<vmem>>, vector<128x512xf32>
    %cst_27 = arith.constant dense<0.000000e+00> : vector<8x512xf32>
    %63 = tpu.matmul %57, %62, %cst_27 {dimension_numbers = #tpu.dot_dimension_numbers<[1], [0], [0], [1], [0, 0, 1, 1], [], []>} : vector<8x128xf32>, vector<128x512xf32>, vector<8x512xf32> -> vector<8x512xf32>
    %64 = arith.addf %61, %63 : vector<8x512xf32>
    %65 = vector.extract_strided_slice %64 {offsets = [0, 0], sizes = [8, 384], strides = [1, 1]} : vector<8x512xf32> to vector<8x384xf32>
    %66 = arith.negf %65 : vector<8x384xf32>
    %67 = math.exp %66 : vector<8x384xf32>
    %cst_28 = arith.constant 1.000000e+00 : f32
    %68 = vector.broadcast %cst_28 : f32 to vector<8x384xf32>
    %69 = arith.addf %68, %67 : vector<8x384xf32>
    %70 = arith.divf %68, %69 : vector<8x384xf32>
    %71 = vector.extract_strided_slice %64 {offsets = [0, 384], sizes = [8, 128], strides = [1, 1]} : vector<8x512xf32> to vector<8x128xf32>
    %72 = math.tanh %71 : vector<8x128xf32>
    %73 = vector.extract_strided_slice %70 {offsets = [0, 128], sizes = [8, 128], strides = [1, 1]} : vector<8x384xf32> to vector<8x128xf32>
    %74 = arith.mulf %73, %54 : vector<8x128xf32>
    %75 = vector.extract_strided_slice %70 {offsets = [0, 0], sizes = [8, 128], strides = [1, 1]} : vector<8x384xf32> to vector<8x128xf32>
    %76 = arith.mulf %75, %72 : vector<8x128xf32>
    %77 = arith.addf %74, %76 : vector<8x128xf32>
    %78 = vector.extract_strided_slice %70 {offsets = [0, 256], sizes = [8, 128], strides = [1, 1]} : vector<8x384xf32> to vector<8x128xf32>
    %79 = math.tanh %77 : vector<8x128xf32>
    %80 = arith.mulf %78, %79 : vector<8x128xf32>
    %c2_i32 = arith.constant 2 : i32
    %c8_i32_29 = arith.constant 8 : i32
    %81 = arith.muli %c2_i32, %c8_i32_29 : i32
    %82 = tpu.assume_multiple %81, 8 : i32
    %83 = arith.index_cast %82 : i32 to index
    %c0_30 = arith.constant 0 : index
    %84 = vector.load %arg13[%83, %c0_30] : memref<64x512xf32, #tpu.memory_space<vmem>>, vector<8x512xf32>
    %c0_31 = arith.constant 0 : index
    %c0_32 = arith.constant 0 : index
    %85 = vector.load %arg3[%c0_31, %c0_32] : memref<128x512xf32, #tpu.memory_space<vmem>>, vector<128x512xf32>
    %cst_33 = arith.constant dense<0.000000e+00> : vector<8x512xf32>
    %86 = tpu.matmul %80, %85, %cst_33 {dimension_numbers = #tpu.dot_dimension_numbers<[1], [0], [0], [1], [0, 0, 1, 1], [], []>} : vector<8x128xf32>, vector<128x512xf32>, vector<8x512xf32> -> vector<8x512xf32>
    %87 = arith.addf %84, %86 : vector<8x512xf32>
    %88 = vector.extract_strided_slice %87 {offsets = [0, 0], sizes = [8, 384], strides = [1, 1]} : vector<8x512xf32> to vector<8x384xf32>
    %89 = arith.negf %88 : vector<8x384xf32>
    %90 = math.exp %89 : vector<8x384xf32>
    %cst_34 = arith.constant 1.000000e+00 : f32
    %91 = vector.broadcast %cst_34 : f32 to vector<8x384xf32>
    %92 = arith.addf %91, %90 : vector<8x384xf32>
    %93 = arith.divf %91, %92 : vector<8x384xf32>
    %94 = vector.extract_strided_slice %87 {offsets = [0, 384], sizes = [8, 128], strides = [1, 1]} : vector<8x512xf32> to vector<8x128xf32>
    %95 = math.tanh %94 : vector<8x128xf32>
    %96 = vector.extract_strided_slice %93 {offsets = [0, 128], sizes = [8, 128], strides = [1, 1]} : vector<8x384xf32> to vector<8x128xf32>
    %97 = arith.mulf %96, %77 : vector<8x128xf32>
    %98 = vector.extract_strided_slice %93 {offsets = [0, 0], sizes = [8, 128], strides = [1, 1]} : vector<8x384xf32> to vector<8x128xf32>
    %99 = arith.mulf %98, %95 : vector<8x128xf32>
    %100 = arith.addf %97, %99 : vector<8x128xf32>
    %101 = vector.extract_strided_slice %93 {offsets = [0, 256], sizes = [8, 128], strides = [1, 1]} : vector<8x384xf32> to vector<8x128xf32>
    %102 = math.tanh %100 : vector<8x128xf32>
    %103 = arith.mulf %101, %102 : vector<8x128xf32>
    %c3_i32 = arith.constant 3 : i32
    %c8_i32_35 = arith.constant 8 : i32
    %104 = arith.muli %c3_i32, %c8_i32_35 : i32
    %105 = tpu.assume_multiple %104, 8 : i32
    %106 = arith.index_cast %105 : i32 to index
    %c0_36 = arith.constant 0 : index
    %107 = vector.load %arg13[%106, %c0_36] : memref<64x512xf32, #tpu.memory_space<vmem>>, vector<8x512xf32>
    %c0_37 = arith.constant 0 : index
    %c0_38 = arith.constant 0 : index
    %108 = vector.load %arg3[%c0_37, %c0_38] : memref<128x512xf32, #tpu.memory_space<vmem>>, vector<128x512xf32>
    %cst_39 = arith.constant dense<0.000000e+00> : vector<8x512xf32>
    %109 = tpu.matmul %103, %108, %cst_39 {dimension_numbers = #tpu.dot_dimension_numbers<[1], [0], [0], [1], [0, 0, 1, 1], [], []>} : vector<8x128xf32>, vector<128x512xf32>, vector<8x512xf32> -> vector<8x512xf32>
    %110 = arith.addf %107, %109 : vector<8x512xf32>
    %111 = vector.extract_strided_slice %110 {offsets = [0, 0], sizes = [8, 384], strides = [1, 1]} : vector<8x512xf32> to vector<8x384xf32>
    %112 = arith.negf %111 : vector<8x384xf32>
    %113 = math.exp %112 : vector<8x384xf32>
    %cst_40 = arith.constant 1.000000e+00 : f32
    %114 = vector.broadcast %cst_40 : f32 to vector<8x384xf32>
    %115 = arith.addf %114, %113 : vector<8x384xf32>
    %116 = arith.divf %114, %115 : vector<8x384xf32>
    %117 = vector.extract_strided_slice %110 {offsets = [0, 384], sizes = [8, 128], strides = [1, 1]} : vector<8x512xf32> to vector<8x128xf32>
    %118 = math.tanh %117 : vector<8x128xf32>
    %119 = vector.extract_strided_slice %116 {offsets = [0, 128], sizes = [8, 128], strides = [1, 1]} : vector<8x384xf32> to vector<8x128xf32>
    %120 = arith.mulf %119, %100 : vector<8x128xf32>
    %121 = vector.extract_strided_slice %116 {offsets = [0, 0], sizes = [8, 128], strides = [1, 1]} : vector<8x384xf32> to vector<8x128xf32>
    %122 = arith.mulf %121, %118 : vector<8x128xf32>
    %123 = arith.addf %120, %122 : vector<8x128xf32>
    %124 = vector.extract_strided_slice %116 {offsets = [0, 256], sizes = [8, 128], strides = [1, 1]} : vector<8x384xf32> to vector<8x128xf32>
    %125 = math.tanh %123 : vector<8x128xf32>
    %126 = arith.mulf %124, %125 : vector<8x128xf32>
    %c4_i32 = arith.constant 4 : i32
    %c8_i32_41 = arith.constant 8 : i32
    %127 = arith.muli %c4_i32, %c8_i32_41 : i32
    %128 = tpu.assume_multiple %127, 8 : i32
    %129 = arith.index_cast %128 : i32 to index
    %c0_42 = arith.constant 0 : index
    %130 = vector.load %arg13[%129, %c0_42] : memref<64x512xf32, #tpu.memory_space<vmem>>, vector<8x512xf32>
    %c0_43 = arith.constant 0 : index
    %c0_44 = arith.constant 0 : index
    %131 = vector.load %arg3[%c0_43, %c0_44] : memref<128x512xf32, #tpu.memory_space<vmem>>, vector<128x512xf32>
    %cst_45 = arith.constant dense<0.000000e+00> : vector<8x512xf32>
    %132 = tpu.matmul %126, %131, %cst_45 {dimension_numbers = #tpu.dot_dimension_numbers<[1], [0], [0], [1], [0, 0, 1, 1], [], []>} : vector<8x128xf32>, vector<128x512xf32>, vector<8x512xf32> -> vector<8x512xf32>
    %133 = arith.addf %130, %132 : vector<8x512xf32>
    %134 = vector.extract_strided_slice %133 {offsets = [0, 0], sizes = [8, 384], strides = [1, 1]} : vector<8x512xf32> to vector<8x384xf32>
    %135 = arith.negf %134 : vector<8x384xf32>
    %136 = math.exp %135 : vector<8x384xf32>
    %cst_46 = arith.constant 1.000000e+00 : f32
    %137 = vector.broadcast %cst_46 : f32 to vector<8x384xf32>
    %138 = arith.addf %137, %136 : vector<8x384xf32>
    %139 = arith.divf %137, %138 : vector<8x384xf32>
    %140 = vector.extract_strided_slice %133 {offsets = [0, 384], sizes = [8, 128], strides = [1, 1]} : vector<8x512xf32> to vector<8x128xf32>
    %141 = math.tanh %140 : vector<8x128xf32>
    %142 = vector.extract_strided_slice %139 {offsets = [0, 128], sizes = [8, 128], strides = [1, 1]} : vector<8x384xf32> to vector<8x128xf32>
    %143 = arith.mulf %142, %123 : vector<8x128xf32>
    %144 = vector.extract_strided_slice %139 {offsets = [0, 0], sizes = [8, 128], strides = [1, 1]} : vector<8x384xf32> to vector<8x128xf32>
    %145 = arith.mulf %144, %141 : vector<8x128xf32>
    %146 = arith.addf %143, %145 : vector<8x128xf32>
    %147 = vector.extract_strided_slice %139 {offsets = [0, 256], sizes = [8, 128], strides = [1, 1]} : vector<8x384xf32> to vector<8x128xf32>
    %148 = math.tanh %146 : vector<8x128xf32>
    %149 = arith.mulf %147, %148 : vector<8x128xf32>
    %c5_i32 = arith.constant 5 : i32
    %c8_i32_47 = arith.constant 8 : i32
    %150 = arith.muli %c5_i32, %c8_i32_47 : i32
    %151 = tpu.assume_multiple %150, 8 : i32
    %152 = arith.index_cast %151 : i32 to index
    %c0_48 = arith.constant 0 : index
    %153 = vector.load %arg13[%152, %c0_48] : memref<64x512xf32, #tpu.memory_space<vmem>>, vector<8x512xf32>
    %c0_49 = arith.constant 0 : index
    %c0_50 = arith.constant 0 : index
    %154 = vector.load %arg3[%c0_49, %c0_50] : memref<128x512xf32, #tpu.memory_space<vmem>>, vector<128x512xf32>
    %cst_51 = arith.constant dense<0.000000e+00> : vector<8x512xf32>
    %155 = tpu.matmul %149, %154, %cst_51 {dimension_numbers = #tpu.dot_dimension_numbers<[1], [0], [0], [1], [0, 0, 1, 1], [], []>} : vector<8x128xf32>, vector<128x512xf32>, vector<8x512xf32> -> vector<8x512xf32>
    %156 = arith.addf %153, %155 : vector<8x512xf32>
    %157 = vector.extract_strided_slice %156 {offsets = [0, 0], sizes = [8, 384], strides = [1, 1]} : vector<8x512xf32> to vector<8x384xf32>
    %158 = arith.negf %157 : vector<8x384xf32>
    %159 = math.exp %158 : vector<8x384xf32>
    %cst_52 = arith.constant 1.000000e+00 : f32
    %160 = vector.broadcast %cst_52 : f32 to vector<8x384xf32>
    %161 = arith.addf %160, %159 : vector<8x384xf32>
    %162 = arith.divf %160, %161 : vector<8x384xf32>
    %163 = vector.extract_strided_slice %156 {offsets = [0, 384], sizes = [8, 128], strides = [1, 1]} : vector<8x512xf32> to vector<8x128xf32>
    %164 = math.tanh %163 : vector<8x128xf32>
    %165 = vector.extract_strided_slice %162 {offsets = [0, 128], sizes = [8, 128], strides = [1, 1]} : vector<8x384xf32> to vector<8x128xf32>
    %166 = arith.mulf %165, %146 : vector<8x128xf32>
    %167 = vector.extract_strided_slice %162 {offsets = [0, 0], sizes = [8, 128], strides = [1, 1]} : vector<8x384xf32> to vector<8x128xf32>
    %168 = arith.mulf %167, %164 : vector<8x128xf32>
    %169 = arith.addf %166, %168 : vector<8x128xf32>
    %170 = vector.extract_strided_slice %162 {offsets = [0, 256], sizes = [8, 128], strides = [1, 1]} : vector<8x384xf32> to vector<8x128xf32>
    %171 = math.tanh %169 : vector<8x128xf32>
    %172 = arith.mulf %170, %171 : vector<8x128xf32>
    %c6_i32 = arith.constant 6 : i32
    %c8_i32_53 = arith.constant 8 : i32
    %173 = arith.muli %c6_i32, %c8_i32_53 : i32
    %174 = tpu.assume_multiple %173, 8 : i32
    %175 = arith.index_cast %174 : i32 to index
    %c0_54 = arith.constant 0 : index
    %176 = vector.load %arg13[%175, %c0_54] : memref<64x512xf32, #tpu.memory_space<vmem>>, vector<8x512xf32>
    %c0_55 = arith.constant 0 : index
    %c0_56 = arith.constant 0 : index
    %177 = vector.load %arg3[%c0_55, %c0_56] : memref<128x512xf32, #tpu.memory_space<vmem>>, vector<128x512xf32>
    %cst_57 = arith.constant dense<0.000000e+00> : vector<8x512xf32>
    %178 = tpu.matmul %172, %177, %cst_57 {dimension_numbers = #tpu.dot_dimension_numbers<[1], [0], [0], [1], [0, 0, 1, 1], [], []>} : vector<8x128xf32>, vector<128x512xf32>, vector<8x512xf32> -> vector<8x512xf32>
    %179 = arith.addf %176, %178 : vector<8x512xf32>
    %180 = vector.extract_strided_slice %179 {offsets = [0, 0], sizes = [8, 384], strides = [1, 1]} : vector<8x512xf32> to vector<8x384xf32>
    %181 = arith.negf %180 : vector<8x384xf32>
    %182 = math.exp %181 : vector<8x384xf32>
    %cst_58 = arith.constant 1.000000e+00 : f32
    %183 = vector.broadcast %cst_58 : f32 to vector<8x384xf32>
    %184 = arith.addf %183, %182 : vector<8x384xf32>
    %185 = arith.divf %183, %184 : vector<8x384xf32>
    %186 = vector.extract_strided_slice %179 {offsets = [0, 384], sizes = [8, 128], strides = [1, 1]} : vector<8x512xf32> to vector<8x128xf32>
    %187 = math.tanh %186 : vector<8x128xf32>
    %188 = vector.extract_strided_slice %185 {offsets = [0, 128], sizes = [8, 128], strides = [1, 1]} : vector<8x384xf32> to vector<8x128xf32>
    %189 = arith.mulf %188, %169 : vector<8x128xf32>
    %190 = vector.extract_strided_slice %185 {offsets = [0, 0], sizes = [8, 128], strides = [1, 1]} : vector<8x384xf32> to vector<8x128xf32>
    %191 = arith.mulf %190, %187 : vector<8x128xf32>
    %192 = arith.addf %189, %191 : vector<8x128xf32>
    %193 = vector.extract_strided_slice %185 {offsets = [0, 256], sizes = [8, 128], strides = [1, 1]} : vector<8x384xf32> to vector<8x128xf32>
    %194 = math.tanh %192 : vector<8x128xf32>
    %195 = arith.mulf %193, %194 : vector<8x128xf32>
    %c7_i32 = arith.constant 7 : i32
    %c8_i32_59 = arith.constant 8 : i32
    %196 = arith.muli %c7_i32, %c8_i32_59 : i32
    %197 = tpu.assume_multiple %196, 8 : i32
    %198 = arith.index_cast %197 : i32 to index
    %c0_60 = arith.constant 0 : index
    %199 = vector.load %arg13[%198, %c0_60] : memref<64x512xf32, #tpu.memory_space<vmem>>, vector<8x512xf32>
    %c0_61 = arith.constant 0 : index
    %c0_62 = arith.constant 0 : index
    %200 = vector.load %arg3[%c0_61, %c0_62] : memref<128x512xf32, #tpu.memory_space<vmem>>, vector<128x512xf32>
    %cst_63 = arith.constant dense<0.000000e+00> : vector<8x512xf32>
    %201 = tpu.matmul %195, %200, %cst_63 {dimension_numbers = #tpu.dot_dimension_numbers<[1], [0], [0], [1], [0, 0, 1, 1], [], []>} : vector<8x128xf32>, vector<128x512xf32>, vector<8x512xf32> -> vector<8x512xf32>
    %202 = arith.addf %199, %201 : vector<8x512xf32>
    %203 = vector.extract_strided_slice %202 {offsets = [0, 0], sizes = [8, 384], strides = [1, 1]} : vector<8x512xf32> to vector<8x384xf32>
    %204 = arith.negf %203 : vector<8x384xf32>
    %205 = math.exp %204 : vector<8x384xf32>
    %cst_64 = arith.constant 1.000000e+00 : f32
    %206 = vector.broadcast %cst_64 : f32 to vector<8x384xf32>
    %207 = arith.addf %206, %205 : vector<8x384xf32>
    %208 = arith.divf %206, %207 : vector<8x384xf32>
    %209 = vector.extract_strided_slice %202 {offsets = [0, 384], sizes = [8, 128], strides = [1, 1]} : vector<8x512xf32> to vector<8x128xf32>
    %210 = math.tanh %209 : vector<8x128xf32>
    %211 = vector.extract_strided_slice %208 {offsets = [0, 128], sizes = [8, 128], strides = [1, 1]} : vector<8x384xf32> to vector<8x128xf32>
    %212 = arith.mulf %211, %192 : vector<8x128xf32>
    %213 = vector.extract_strided_slice %208 {offsets = [0, 0], sizes = [8, 128], strides = [1, 1]} : vector<8x384xf32> to vector<8x128xf32>
    %214 = arith.mulf %213, %210 : vector<8x128xf32>
    %215 = arith.addf %212, %214 : vector<8x128xf32>
    %216 = vector.extract_strided_slice %208 {offsets = [0, 256], sizes = [8, 128], strides = [1, 1]} : vector<8x384xf32> to vector<8x128xf32>
    %217 = math.tanh %215 : vector<8x128xf32>
    %218 = arith.mulf %216, %217 : vector<8x128xf32>
    %c8_i32_65 = arith.constant 8 : i32
    %c0_66 = arith.constant 0 : index
    %c0_67 = arith.constant 0 : index
    %219 = vector.load %arg7[%c0_66, %c0_67] : memref<128x128xf32, #tpu.memory_space<vmem>>, vector<128x128xf32>
    %cst_68 = arith.constant dense<0.000000e+00> : vector<8x128xf32>
    %220 = tpu.matmul %218, %219, %cst_68 {dimension_numbers = #tpu.dot_dimension_numbers<[1], [0], [0], [1], [0, 0, 1, 1], [], []>} : vector<8x128xf32>, vector<128x128xf32>, vector<8x128xf32> -> vector<8x128xf32>
    %c0_69 = arith.constant 0 : index
    %c0_70 = arith.constant 0 : index
    %221 = vector.load %arg8[%c0_69, %c0_70] : memref<128x128xf32, #tpu.memory_space<vmem>>, vector<128x128xf32>
    %cst_71 = arith.constant dense<0.000000e+00> : vector<8x128xf32>
    %222 = tpu.matmul %32, %221, %cst_71 {dimension_numbers = #tpu.dot_dimension_numbers<[1], [0], [0], [1], [0, 0, 1, 1], [], []>} : vector<8x128xf32>, vector<128x128xf32>, vector<8x128xf32> -> vector<8x128xf32>
    %223 = arith.addf %220, %222 : vector<8x128xf32>
    %c0_72 = arith.constant 0 : index
    %c0_73 = arith.constant 0 : index
    %224 = vector.load %arg9[%c0_72, %c0_73] : memref<1x128xf32, #tpu.memory_space<vmem>>, vector<1x128xf32>
    %225 = vector.broadcast %224 : vector<1x128xf32> to vector<8x128xf32>
    %226 = arith.addf %223, %225 : vector<8x128xf32>
    %cst_74 = arith.constant 0.000000e+00 : f32
    %227 = vector.broadcast %cst_74 : f32 to vector<8x128xf32>
    %228 = arith.maximumf %226, %227 : vector<8x128xf32>
    %c0_75 = arith.constant 0 : index
    %c0_76 = arith.constant 0 : index
    %229 = vector.load %arg10[%c0_75, %c0_76] : memref<128x128xf32, #tpu.memory_space<vmem>>, vector<128x128xf32>
    %cst_77 = arith.constant dense<0.000000e+00> : vector<8x128xf32>
    %230 = tpu.matmul %228, %229, %cst_77 {dimension_numbers = #tpu.dot_dimension_numbers<[1], [0], [0], [1], [0, 0, 1, 1], [], []>} : vector<8x128xf32>, vector<128x128xf32>, vector<8x128xf32> -> vector<8x128xf32>
    %c0_78 = arith.constant 0 : index
    %c0_79 = arith.constant 0 : index
    %231 = vector.load %arg11[%c0_78, %c0_79] : memref<1x128xf32, #tpu.memory_space<vmem>>, vector<1x128xf32>
    %232 = vector.broadcast %231 : vector<1x128xf32> to vector<8x128xf32>
    %233 = arith.addf %230, %232 : vector<8x128xf32>
    %c0_80 = arith.constant 0 : index
    %c0_81 = arith.constant 0 : index
    %234 = vector.load %arg12[%c0_80, %c0_81] : memref<8x128xf32, #tpu.memory_space<vmem>>, vector<8x128xf32>
    tpu.vector_store %arg12[%c0_80, %c0_81], %233 {strides = array<i32>} : memref<8x128xf32, #tpu.memory_space<vmem>>, vector<8x128xf32>,
    return
  }
}

</mosaic_0001>

<bundles_post_ra>
// kernel: forward.1
= control target key start
LH: loop header
LB: loop body
LE: loop exit
PB: predicated region body
PF: predicated region fallthrough
CT: control target
= control target key end

     0   :  { %17 = vsyncpa [#allocation4], 0  ;;  %s4893_s0 = inlined_call_operand.vmem [shape: s32[64,1], index: 0, kind: input, shape index: {}]   ;;  %s4894_s1 = inlined_call_operand.hbm [shape: f32[128,128], index: 1, kind: input, shape index: {}]   ;;  %s4895_s2 = inlined_call_operand.hbm [shape: f32[128,512], index: 2, kind: input, shape index: {}]   ;;  %s4896_s3 = inlined_call_operand.hbm [shape: f32[128,512], index: 3, kind: input, shape index: {}]   ;;  %s4897_s4 = inlined_call_operand.hbm [shape: f32[1,512], index: 4, kind: input, shape index: {}]   ;;  %s4898_s5 = inlined_call_operand.hbm [shape: f32[128,512], index: 5, kind: input, shape index: {}]   ;;  %s4899_s6 = inlined_call_operand.hbm [shape: f32[1,512], index: 6, kind: input, shape index: {}]   ;;  %s4900_s7 = inlined_call_operand.hbm [shape: f32[128,128], index: 7, kind: input, shape index: {}]   ;;  %s4901_s8 = inlined_call_operand.hbm [shape: f32[128,128], index: 8, kind: input, shape index: {}]   ;;  %s4902_s9 = inlined_call_operand.vmem [shape: f32[1,128], index: 9, kind: input, shape index: {}]   ;;  %s4903_s10 = inlined_call_operand.vmem [shape: f32[128,128], index: 10, kind: input, shape index: {}]   ;;  %s4904_s11 = inlined_call_operand.hbm [shape: f32[1,128], index: 11, kind: input, shape index: {}]   ;;  %s4905_s12 = inlined_call_operand.vmem [shape: f32[8,128], index: 12, kind: output, shape index: {}]  }
   0x1   :  { %18 = vsyncpa [#allocation6], 0 }
   0x2   :  { %19 = vsyncpa [#allocation9], 0 }
   0x3   :  { %20 = vsyncpa [#allocation12], 0 }
   0x4   :  { %21 = vsyncpa [#allocation15], 0  ;;  %s4133_s21 = smov [#allocation5]   ;;  %s3925_s25 = scalar_lea.hbm %s4895_s2, 8192 }
   0x5   :  { %s41_s22 = sshll.u32 %s4133_s21, 4  ;;  %p3926_p0 = scmp.ne.s32.totalorder %s4895_s2, %s3925_s25  ;;  %s42_s22 = int_to_ptr.vmem [resolvable:$true] %s41_s22 }
   0x6   :  { %p3929_p1 = scmp.lt.u32.totalorder %s3925_s25, %s4895_s2 }
   0x8   :  { %p3931_p2 = pnand %p3929_p1, %p3926_p0 }
   0xa   :  { %3934 = shalt.err (!%p3931_p2)
}
   0xb   :  { %s3935_s30 = scalar_lea.vmem %s42_s22, 8192  ;;  %p3940_p4 = scmp.lt.s32.totalorder %s42_s22, %s42_s22 }
   0xc   :  { %p3936_p3 = scmp.ne.s32.totalorder %s42_s22, %s3935_s30  ;;  %p3941_p5 = scmp.lt.s32.totalorder %s3935_s30, %s3935_s30 }
   0xe   :  { %p3942_p6 = por %p3941_p5, %p3940_p4 }
  0x10   :  { %p3943_p7 = pnand %p3942_p6, %p3936_p3 }
  0x12   :  { %3946 = shalt.err (!%p3943_p7)
}
  0x13   :  { %s4134_s13 = smov 512   ;;  %s4135_s14 = smov 32  }
  0x14   :  { %47 = dma.hbm_to_vmem [thread:$0]  %s4895_s2, 8192, %s42_s22, [#allocation6], %s4134_s13, %s4134_s13, %s4135_s14  }
  0x15   :  { %s4136_s17 = smov [#allocation8]   ;;  %s4137_s19 = smov [#allocation11]  }
  0x16   :  { %s66_s18 = sshll.u32 %s4136_s17, 4  ;;  %s88_s20 = sshll.u32 %s4137_s19, 4  ;;  %s67_s18 = int_to_ptr.vmem [resolvable:$true] %s66_s18  ;;  %s89_s20 = int_to_ptr.vmem [resolvable:$true] %s88_s20 }
  0x17   :  { %s3947_s24 = scalar_lea.hbm %s4897_s4, 64 }
  0x18   :  { %p3948_p8 = scmp.ne.s32.totalorder %s4897_s4, %s3947_s24  ;;  %p3951_p9 = scmp.lt.u32.totalorder %s3947_s24, %s4897_s4 }
  0x1a   :  { %p3953_p10 = pnand %p3951_p9, %p3948_p8 }
  0x1c   :  { %3956 = shalt.err (!%p3953_p10)
}
  0x1d   :  { %s3957_s2 = scalar_lea.vmem %s67_s18, 64  ;;  %p3962_p12 = scmp.lt.s32.totalorder %s67_s18, %s67_s18 }
  0x1e   :  { %p3958_p11 = scmp.ne.s32.totalorder %s67_s18, %s3957_s2  ;;  %p3963_p13 = scmp.lt.s32.totalorder %s3957_s2, %s3957_s2 }
  0x20   :  { %p3964_p0 = por %p3963_p13, %p3962_p12 }
  0x22   :  { %p3965_p1 = pnand %p3964_p0, %p3958_p11 }
  0x24   :  { %3968 = shalt.err (!%p3965_p1)
}
  0x25   :  { %69 = dma.hbm_to_vmem [thread:$0]  %s4897_s4, 64, %s67_s18, [#allocation9]  }
  0x26   :  { %s3969_s16 = scalar_lea.hbm %s4899_s6, 64 }
  0x27   :  { %p3970_p2 = scmp.ne.s32.totalorder %s4899_s6, %s3969_s16  ;;  %p3973_p3 = scmp.lt.u32.totalorder %s3969_s16, %s4899_s6 }
  0x29   :  { %p3975_p4 = pnand %p3973_p3, %p3970_p2 }
  0x2b   :  { %3978 = shalt.err (!%p3975_p4)
}
  0x2c   :  { %s3979_s24 = scalar_lea.vmem %s89_s20, 64  ;;  %p3984_p6 = scmp.lt.s32.totalorder %s89_s20, %s89_s20 }
  0x2d   :  { %p3980_p5 = scmp.ne.s32.totalorder %s89_s20, %s3979_s24  ;;  %p3985_p7 = scmp.lt.s32.totalorder %s3979_s24, %s3979_s24 }
  0x2f   :  { %p3986_p8 = por %p3985_p7, %p3984_p6 }
  0x31   :  { %p3987_p9 = pnand %p3986_p8, %p3980_p5 }
  0x33   :  { %3990 = shalt.err (!%p3987_p9)
}
  0x34   :  { %91 = dma.hbm_to_vmem [thread:$0]  %s4899_s6, 64, %s89_s20, [#allocation12]  }
  0x35   :  { %s4138_s25 = smov [#allocation14]   ;;  %s4139_s27 = smov [#allocation3]  }
  0x36   :  { %s109_s26 = sshll.u32 %s4138_s25, 4  ;;  %s29_s28 = sshll.u32 %s4139_s27, 4  ;;  %s110_s26 = int_to_ptr.vmem [resolvable:$true] %s109_s26  ;;  %s30_s28 = int_to_ptr.vmem [resolvable:$true] %s29_s28 }
  0x37   :  { %s3991_s29 = scalar_lea.hbm %s4901_s8, 2048 }
  0x38   :  { %p3992_p10 = scmp.ne.s32.totalorder %s4901_s8, %s3991_s29  ;;  %p3995_p11 = scmp.lt.u32.totalorder %s3991_s29, %s4901_s8 }
  0x3a   :  { %p3997_p12 = pnand %p3995_p11, %p3992_p10 }
  0x3c   :  { %4000 = shalt.err (!%p3997_p12)
}
  0x3d   :  { %s4001_s6 = scalar_lea.vmem %s110_s26, 2048  ;;  %p4006_p0 = scmp.lt.s32.totalorder %s110_s26, %s110_s26 }
  0x3e   :  { %p4002_p13 = scmp.ne.s32.totalorder %s110_s26, %s4001_s6  ;;  %p4007_p1 = scmp.lt.s32.totalorder %s4001_s6, %s4001_s6 }
  0x40   :  { %p4008_p2 = por %p4007_p1, %p4006_p0 }
  0x42   :  { %p4009_p3 = pnand %p4008_p2, %p4002_p13 }
  0x44   :  { %4012 = shalt.err (!%p4009_p3)
}
  0x45   :  { %s4140_s20 = smov 128   ;;  %s4141_s19 = smov 8  }
  0x46   :  { %115 = dma.hbm_to_vmem [thread:$0]  %s4901_s8, 2048, %s110_s26, [#allocation15], %s4140_s20, %s4140_s20, %s4141_s19  }
  0x47   :  { %s4013_s18 = scalar_lea.hbm %s4894_s1, 2048 }
  0x48   :  { %p4014_p4 = scmp.ne.s32.totalorder %s4894_s1, %s4013_s18  ;;  %p4017_p5 = scmp.lt.u32.totalorder %s4013_s18, %s4894_s1 }
  0x4a   :  { %p4019_p6 = pnand %p4017_p5, %p4014_p4 }
  0x4c   :  { %4022 = shalt.err (!%p4019_p6)
}
  0x4d   :  { %s4023_s29 = scalar_lea.vmem %s30_s28, 2048  ;;  %p4028_p8 = scmp.lt.s32.totalorder %s30_s28, %s30_s28 }
  0x4e   :  { %p4024_p7 = scmp.ne.s32.totalorder %s30_s28, %s4023_s29  ;;  %p4029_p9 = scmp.lt.s32.totalorder %s4023_s29, %s4023_s29 }
  0x50   :  { %p4030_p10 = por %p4029_p9, %p4028_p8 }
  0x52   :  { %p4031_p11 = pnand %p4030_p10, %p4024_p7 }
  0x54   :  { %4034 = shalt.err (!%p4031_p11)
}
  0x55   :  { %35 = dma.hbm_to_vmem [thread:$0]  %s4894_s1, 2048, %s30_s28, [#allocation4], %s4140_s20, %s4140_s20, %s4141_s19  }
  0x56   :  { %s4142_s30 = smov [#allocation7]   ;;  %s4143_s16 = smov [#allocation10]  }
  0x57   :  { %s53_s15 = sshll.u32 %s4142_s30, 4  ;;  %s75_s17 = sshll.u32 %s4143_s16, 4  ;;  %s54_s15 = int_to_ptr.vmem [resolvable:$true] %s53_s15  ;;  %s76_s17 = int_to_ptr.vmem [resolvable:$true] %s75_s17 }
  0x58   :  { %s4035_s23 = scalar_lea.hbm %s4896_s3, 8192 }
  0x59   :  { %p4036_p12 = scmp.ne.s32.totalorder %s4896_s3, %s4035_s23  ;;  %p4039_p13 = scmp.lt.u32.totalorder %s4035_s23, %s4896_s3 }
  0x5b   :  { %p4041_p0 = pnand %p4039_p13, %p4036_p12 }
  0x5d   :  { %4044 = shalt.err (!%p4041_p0)
}
  0x5e   :  { %s4045_s1 = scalar_lea.vmem %s54_s15, 8192  ;;  %p4050_p2 = scmp.lt.s32.totalorder %s54_s15, %s54_s15 }
  0x5f   :  { %p4046_p1 = scmp.ne.s32.totalorder %s54_s15, %s4045_s1  ;;  %p4051_p3 = scmp.lt.s32.totalorder %s4045_s1, %s4045_s1 }
  0x61   :  { %p4052_p4 = por %p4051_p3, %p4050_p2 }
  0x63   :  { %p4053_p5 = pnand %p4052_p4, %p4046_p1 }
  0x65   :  { %4056 = shalt.err (!%p4053_p5)
}
  0x66   :  { %59 = dma.hbm_to_vmem [thread:$0]  %s4896_s3, 8192, %s54_s15, [#allocation6], %s4134_s13, %s4134_s13, %s4135_s14  }
  0x67   :  { %s4057_s29 = scalar_lea.hbm %s4898_s5, 8192 }
  0x68   :  { %p4058_p6 = scmp.ne.s32.totalorder %s4898_s5, %s4057_s29  ;;  %p4061_p7 = scmp.lt.u32.totalorder %s4057_s29, %s4898_s5 }
  0x6a   :  { %p4063_p8 = pnand %p4061_p7, %p4058_p6 }
  0x6c   :  { %4066 = shalt.err (!%p4063_p8)
}
  0x6d   :  { %s4067_s6 = scalar_lea.vmem %s76_s17, 8192  ;;  %p4072_p10 = scmp.lt.s32.totalorder %s76_s17, %s76_s17 }
  0x6e   :  { %p4068_p9 = scmp.ne.s32.totalorder %s76_s17, %s4067_s6  ;;  %p4073_p11 = scmp.lt.s32.totalorder %s4067_s6, %s4067_s6 }
  0x70   :  { %p4074_p12 = por %p4073_p11, %p4072_p10 }
  0x72   :  { %p4075_p13 = pnand %p4074_p12, %p4068_p9 }
  0x74   :  { %4078 = shalt.err (!%p4075_p13)
}
  0x75   :  { %81 = dma.hbm_to_vmem [thread:$0]  %s4898_s5, 8192, %s76_s17, [#allocation9], %s4134_s13, %s4134_s13, %s4135_s14  }
  0x76   :  { %s4144_s21 = smov [#allocation13]   ;;  %s4145_s24 = smov [#allocation16]  }
  0x77   :  { %s97_s23 = sshll.u32 %s4144_s21, 4  ;;  %s126_s4 = sshll.u32 %s4145_s24, 4  ;;  %s98_s23 = int_to_ptr.vmem [resolvable:$true] %s97_s23  ;;  %s127_s4 = int_to_ptr.vmem [resolvable:$true] %s126_s4 }
  0x78   :  { %s4079_s1 = scalar_lea.hbm %s4900_s7, 2048 }
  0x79   :  { %p4080_p0 = scmp.ne.s32.totalorder %s4900_s7, %s4079_s1  ;;  %p4083_p1 = scmp.lt.u32.totalorder %s4079_s1, %s4900_s7 }
  0x7b   :  { %p4085_p2 = pnand %p4083_p1, %p4080_p0 }
  0x7d   :  { %4088 = shalt.err (!%p4085_p2)
}
  0x7e   :  { %s4089_s5 = scalar_lea.vmem %s98_s23, 2048  ;;  %p4094_p4 = scmp.lt.s32.totalorder %s98_s23, %s98_s23 }
  0x7f   :  { %p4090_p3 = scmp.ne.s32.totalorder %s98_s23, %s4089_s5  ;;  %p4095_p5 = scmp.lt.s32.totalorder %s4089_s5, %s4089_s5 }
  0x81   :  { %p4096_p6 = por %p4095_p5, %p4094_p4 }
  0x83   :  { %p4097_p7 = pnand %p4096_p6, %p4090_p3 }
  0x85   :  { %4100 = shalt.err (!%p4097_p7)
}
  0x86   :  { %103 = dma.hbm_to_vmem [thread:$0]  %s4900_s7, 2048, %s98_s23, [#allocation12], %s4140_s20, %s4140_s20, %s4141_s19  }
  0x87   :  { %s4101_s8 = scalar_lea.hbm %s4904_s11, 16 }
  0x88   :  { %p4102_p8 = scmp.ne.s32.totalorder %s4904_s11, %s4101_s8  ;;  %p4105_p9 = scmp.lt.u32.totalorder %s4101_s8, %s4904_s11 }
  0x8a   :  { %p4107_p10 = pnand %p4105_p9, %p4102_p8 }
  0x8c   :  { %4110 = shalt.err (!%p4107_p10)
}
  0x8d   :  { %s4111_s3 = scalar_lea.vmem %s127_s4, 16  ;;  %s4115_s15 = scalar_lea.vmem %s127_s4, 32 }
  0x8e   :  { %p4112_p11 = scmp.ne.s32.totalorder %s127_s4, %s4111_s3  ;;  %p4116_p12 = scmp.lt.s32.totalorder %s127_s4, %s127_s4 }
  0x8f   :  { %p4117_p13 = scmp.lt.s32.totalorder %s4115_s15, %s4111_s3 }
  0x91   :  { %p4118_p0 = por %p4117_p13, %p4116_p12 }
  0x93   :  { %p4119_p1 = pnand %p4118_p0, %p4112_p11 }
  0x95   :  { %4122 = shalt.err (!%p4119_p1)
}
  0x96   :  { %129 = dma.hbm_to_vmem [thread:$0]  %s4904_s11, 16, %s127_s4, [#allocation15]  }
  0x97   :  { %4123 = dma.done.wait [#allocation4], 2048  }
  0x98   :  { %4124 = vsyncadd [#allocation4], 4294965248 }
  0x99   :  { %4125 = dma.done.wait [#allocation6], 16384  }
  0x9a   :  { %4126 = vsyncadd [#allocation6], 4294950912 }
  0x9b   :  { %4127 = dma.done.wait [#allocation9], 8256  }
  0x9c   :  { %4128 = vsyncadd [#allocation9], 4294959040 }
  0x9d   :  { %4129 = dma.done.wait [#allocation12], 2112  }
  0x9e   :  { %4130 = vsyncadd [#allocation12], 4294965184 }
  0x9f   :  { %4131 = dma.done.wait [#allocation15], 2064  }
  0xa0   :  { %4132 = vsyncadd [#allocation15], 4294965232  ;;  %v4146_v0 = vmov 0   ;;  %v159_v1 = vld [vmem:[%s4893_s0 + $0x10] sm:$0xff]  ;;  %v157_v2 = vld [vmem:[%s4893_s0] sm:$0xff]  ;;  %vm4150_vm8 = vmmov 0  }
  0xa1   :  { %3784 = vset.pattern.permute.xlu1 %v4146_v0  ;;  %3783 = vset.pattern.permute.xlu0 %v4146_v0  ;;  %v160_v3 = vld [vmem:[%s4893_s0 + $0x18] sm:$0xff]  ;;  %v158_v4 = vld [vmem:[%s4893_s0 + $0x8] sm:$0xff]  ;;  %v215_v5 = vld [vmem:[#allocation3] sm:$0xff] }
  0xa2   :  { %174 = vperm.xlu1 %3784, %v159_v1   ;;  %168 = vperm.xlu0 %3783, %v157_v2   ;;  %v216_v6 = vld [vmem:[#allocation3 + $0x8] sm:$0xff]  ;;  %v217_v7 = vld [vmem:[#allocation3 + $0x10] sm:$0xff]  ;;  %v218_v8 = vld [vmem:[#allocation3 + $0x18] sm:$0xff] }
  0xa3   :  { %v2957_v9 = vpack.c.bf16 %v216_v6, %v215_v5  ;;  %v2961_v10 = vpack.c.bf16 %v218_v8, %v217_v7  ;;  %v219_v11 = vld [vmem:[#allocation3 + $0x20] sm:$0xff]  ;;  %v220_v12 = vld [vmem:[#allocation3 + $0x28] sm:$0xff]  ;;  %v221_v16 = vld [vmem:[#allocation3 + $0x30] sm:$0xff] }
  0xa4   :  { %v162_v13 = vld [vmem:[%s4893_s0 + $0x28] sm:$0xff]  ;;  %v161_v14 = vld [vmem:[%s4893_s0 + $0x20] sm:$0xff]  ;;  %v2965_v15 = vpack.c.bf16 %v220_v12, %v219_v11  ;;  %v222_v17 = vld [vmem:[#allocation3 + $0x38] sm:$0xff] }
  0xa5   :  { %2958 = vmatprep.subr.bf16.mxu0 %v2957_v9  ;;  %v164_v18 = vld [vmem:[%s4893_s0 + $0x38] sm:$0xff]  ;;  %v163_v19 = vld [vmem:[%s4893_s0 + $0x30] sm:$0xff]  ;;  %v2969_v20 = vpack.c.bf16 %v222_v17, %v221_v16  ;;  %v223_v21 = vld [vmem:[#allocation3 + $0x40] sm:$0xff] }
  0xa6   :  { %177 = vperm.xlu1 %3784, %v160_v3   ;;  %171 = vperm.xlu0 %3783, %v158_v4   ;;  %v224_v22 = vld [vmem:[#allocation3 + $0x48] sm:$0xff]  ;;  %v225_v24 = vld [vmem:[#allocation3 + $0x50] sm:$0xff]  ;;  %v226_v25 = vld [vmem:[#allocation3 + $0x58] sm:$0xff] }
  0xa7   :  { %2960 = vmatpush3.bf16.msra.mxu0 %v2957_v9  ;;  %v2973_v23 = vpack.c.bf16 %v224_v22, %v223_v21  ;;  %v337_v26 = vld [vmem:[#allocation5 + $0x8] sm:$0xff]  ;;  %v336_v29 = vld [vmem:[#allocation5] sm:$0xff]  ;;  %v2977_v31 = vpack.c.bf16 %v226_v25, %v225_v24  ;;  %v229_v46 = vld [vmem:[#allocation3 + $0x70] sm:$0xff] }
  0xa8   :  { %2962 = vmatprep.subr.bf16.mxu0 %v2961_v10  ;;  %v341_v27 = vld [vmem:[#allocation5 + $0x28] sm:$0xff]  ;;  %v340_v30 = vld [vmem:[#allocation5 + $0x20] sm:$0xff]  ;;  %v230_v47 = vld [vmem:[#allocation3 + $0x78] sm:$0xff] }
  0xa9   :  { %v2989_v28 = vpack.c.bf16 %v341_v27, %v337_v26  ;;  %v2991_v32 = vpack.c.bf16 %v340_v30, %v336_v29  ;;  %v345_v33 = vld [vmem:[#allocation5 + $0x48] sm:$0xff]  ;;  %v227_v34 = vld [vmem:[#allocation3 + $0x60] sm:$0xff]  ;;  %v2985_v55 = vpack.c.bf16 %v230_v47, %v229_v46  ;;  %v339_v57 = vld [vmem:[#allocation5 + $0x18] sm:$0xff] }
  0xaa   :  { %183 = vperm.xlu1 %3784, %v162_v13   ;;  %180 = vperm.xlu0 %3783, %v161_v14   ;;  %v228_v35 = vld [vmem:[#allocation3 + $0x68] sm:$0xff]  ;;  %v344_v38 = vld [vmem:[#allocation5 + $0x40] sm:$0xff]  ;;  %v343_v58 = vld [vmem:[#allocation5 + $0x38] sm:$0xff] }
  0xab   :  { %2964 = vmatpush3.bf16.msra.mxu0 %v2961_v10  ;;  %2990 = vmatprep.subr.bf16.mxu1 %v2989_v28  ;;  %v349_v36 = vld [vmem:[#allocation5 + $0x68] sm:$0xff]  ;;  %v348_v39 = vld [vmem:[#allocation5 + $0x60] sm:$0xff]  ;;  %v2981_v43 = vpack.c.bf16 %v228_v35, %v227_v34  ;;  %v3021_v0 = vpack.c.bf16 %v343_v58, %v339_v57  ;;  %v338_v24 = vld [vmem:[#allocation5 + $0x10] sm:$0xff]  ;;  %v4147_v28 = vmov 1.0  }
  0xac   :  { %2966 = vmatprep.subr.bf16.mxu0 %v2965_v15  ;;  %2992 = vmatpush1.bf16.msra.mxu1 %v2991_v32  ;;  %v2993_v37 = vpack.c.bf16 %v349_v36, %v345_v33  ;;  %v2995_v40 = vpack.c.bf16 %v348_v39, %v344_v38  ;;  %v353_v41 = vld [vmem:[#allocation5 + $0x88] sm:$0xff]  ;;  %v352_v45 = vld [vmem:[#allocation5 + $0x80] sm:$0xff]  ;;  %v342_v25 = vld [vmem:[#allocation5 + $0x30] sm:$0xff] }
  0xad   :  { %v357_v42 = vld [vmem:[#allocation5 + $0xa8] sm:$0xff]  ;;  %v356_v48 = vld [vmem:[#allocation5 + $0xa0] sm:$0xff]  ;;  %v347_v26 = vld [vmem:[#allocation5 + $0x58] sm:$0xff]  ;;  %v3023_v29 = vpack.c.bf16 %v342_v25, %v338_v24 }
  0xae   :  { %189 = vperm.xlu1 %3784, %v164_v18   ;;  %186 = vperm.xlu0 %3783, %v163_v19   ;;  %v2997_v44 = vpack.c.bf16 %v357_v42, %v353_v41  ;;  %v2999_v49 = vpack.c.bf16 %v356_v48, %v352_v45  ;;  %v361_v50 = vld [vmem:[#allocation5 + $0xc8] sm:$0xff]  ;;  %v360_v53 = vld [vmem:[#allocation5 + $0xc0] sm:$0xff]  ;;  %v351_v27 = vld [vmem:[#allocation5 + $0x78] sm:$0xff] }
  0xaf   :  { %2968 = vmatpush3.bf16.msra.mxu0 %v2965_v15  ;;  %2994 = vmatprep.subr.bf16.mxu1 %v2993_v37  ;;  %v365_v51 = vld [vmem:[#allocation5 + $0xe8] sm:$0xff]  ;;  %v364_v54 = vld [vmem:[#allocation5 + $0xe0] sm:$0xff]  ;;  %v3025_v32 = vpack.c.bf16 %v351_v27, %v347_v26  ;;  %v346_v33 = vld [vmem:[#allocation5 + $0x50] sm:$0xff] }
  0xb0   :  { %2970 = vmatprep.subr.bf16.mxu0 %v2969_v20  ;;  %2996 = vmatpush1.bf16.msra.mxu1 %v2995_v40  ;;  %v3001_v52 = vpack.c.bf16 %v365_v51, %v361_v50  ;;  %v369_v56 = vld [vmem:[#allocation5 + $0x108] sm:$0xff]  ;;  %v3003_v60 = vpack.c.bf16 %v364_v54, %v360_v53  ;;  %v368_v62 = vld [vmem:[#allocation5 + $0x100] sm:$0xff]  ;;  %v350_v34 = vld [vmem:[#allocation5 + $0x70] sm:$0xff] }
  0xb1   :  { %2998 = vmatprep.subr.bf16.mxu1 %v2997_v44  ;;  %v373_v59 = vld [vmem:[#allocation5 + $0x128] sm:$0xff]  ;;  %v372_v63 = vld [vmem:[#allocation5 + $0x120] sm:$0xff]  ;;  %v355_v35 = vld [vmem:[#allocation5 + $0x98] sm:$0xff]  ;;  %v3027_v37 = vpack.c.bf16 %v350_v34, %v346_v33 }
  0xb2   :  { %v3005_v61 = vpack.c.bf16 %v373_v59, %v369_v56  ;;  %v377_v1 = vld [vmem:[#allocation5 + $0x148] sm:$0xff]  ;;  %v3007_v3 = vpack.c.bf16 %v372_v63, %v368_v62  ;;  %v376_v5 = vld [vmem:[#allocation5 + $0x140] sm:$0xff]  ;;  %v359_v36 = vld [vmem:[#allocation5 + $0xb8] sm:$0xff] }
  0xb3   :  { %2972 = vmatpush3.bf16.msra.mxu0 %v2969_v20  ;;  %v381_v2 = vld [vmem:[#allocation5 + $0x168] sm:$0xff]  ;;  %v380_v6 = vld [vmem:[#allocation5 + $0x160] sm:$0xff]  ;;  %v165_v20 = vlaneseq  ;;  %v3029_v40 = vpack.c.bf16 %v359_v36, %v355_v35  ;;  %v354_v41 = vld [vmem:[#allocation5 + $0x90] sm:$0xff] }
  0xb4   :  { %2974 = vmatprep.subr.bf16.mxu0 %v2973_v23  ;;  %3000 = vmatpush1.bf16.msra.mxu1 %v2999_v49  ;;  %v3009_v4 = vpack.c.bf16 %v381_v2, %v377_v1  ;;  %v385_v7 = vld [vmem:[#allocation5 + $0x188] sm:$0xff]  ;;  %v3011_v9 = vpack.c.bf16 %v380_v6, %v376_v5  ;;  %v384_v11 = vld [vmem:[#allocation5 + $0x180] sm:$0xff]  ;;  %v358_v42 = vld [vmem:[#allocation5 + $0xb0] sm:$0xff] }
  0xb5   :  { %3002 = vmatprep.subr.bf16.mxu1 %v3001_v52  ;;  %v389_v8 = vld [vmem:[#allocation5 + $0x1a8] sm:$0xff]  ;;  %v388_v12 = vld [vmem:[#allocation5 + $0x1a0] sm:$0xff]  ;;  %v166_v21 = vand.u32 127, %v165_v20  ;;  %v367_v44 = vld [vmem:[#allocation5 + $0xf8] sm:$0xff]  ;;  %v3031_v45 = vpack.c.bf16 %v358_v42, %v354_v41 }
  0xb6   :  { %v3013_v10 = vpack.c.bf16 %v389_v8, %v385_v7  ;;  %v393_v13 = vld [vmem:[#allocation5 + $0x1c8] sm:$0xff]  ;;  %v3015_v15 = vpack.c.bf16 %v388_v12, %v384_v11  ;;  %v392_v17 = vld [vmem:[#allocation5 + $0x1c0] sm:$0xff]  ;;  %v362_v48 = vld [vmem:[#allocation5 + $0xd0] sm:$0xff] }
  0xb7   :  { %2976 = vmatpush3.bf16.msra.mxu0 %v2973_v23  ;;  %v397_v14 = vld [vmem:[#allocation5 + $0x1e8] sm:$0xff]  ;;  %v396_v18 = vld [vmem:[#allocation5 + $0x1e0] sm:$0xff]  ;;  %v366_v49 = vld [vmem:[#allocation5 + $0xf0] sm:$0xff] }
  0xb8   :  { %2978 = vmatprep.subr.bf16.mxu0 %v2977_v31  ;;  %3004 = vmatpush1.bf16.msra.mxu1 %v3003_v60  ;;  %v3017_v16 = vpack.c.bf16 %v397_v14, %v393_v13  ;;  %v3019_v19 = vpack.c.bf16 %v396_v18, %v392_v17  ;;  %v371_v50 = vld [vmem:[#allocation5 + $0x118] sm:$0xff]  ;;  %v3035_v53 = vpack.c.bf16 %v366_v49, %v362_v48  ;;  %v374_v56 = vld [vmem:[#allocation5 + $0x130] sm:$0xff]  ;;  %v4148_v18 = vmov 0.0  }
  0xb9   :  { %3006 = vmatprep.subr.bf16.mxu1 %v3005_v61  ;;  %v375_v51 = vld [vmem:[#allocation5 + $0x138] sm:$0xff]  ;;  %v378_v61 = vld [vmem:[#allocation5 + $0x150] sm:$0xff]  ;;  %486 = vmatprep.mubr.f32.mxu1 %v4148_v18 }
  0xba   :  { %v3037_v54 = vpack.c.bf16 %v375_v51, %v371_v50  ;;  %v379_v57 = vld [vmem:[#allocation5 + $0x158] sm:$0xff]  ;;  %v382_v62 = vld [vmem:[#allocation5 + $0x170] sm:$0xff] }
  0xbb   :  { %2980 = vmatpush3.bf16.msra.mxu0 %v2977_v31  ;;  %v383_v58 = vld [vmem:[#allocation5 + $0x178] sm:$0xff]  ;;  %v3043_v1 = vpack.c.bf16 %v382_v62, %v378_v61  ;;  %v681_v12 = vld [vmem:[#allocation10 + $0x8] sm:$0xff] }
  0xbc   :  { %2982 = vmatprep.subr.bf16.mxu0 %v2981_v43  ;;  %3008 = vmatpush1.bf16.msra.mxu1 %v3007_v3  ;;  %v3041_v60 = vpack.c.bf16 %v383_v58, %v379_v57  ;;  %v387_v63 = vld [vmem:[#allocation5 + $0x198] sm:$0xff]  ;;  %v386_v3 = vld [vmem:[#allocation5 + $0x190] sm:$0xff]  ;;  %v704_v58 = vld [vmem:[#allocation10 + $0xc0] sm:$0xff] }
  0xbd   :  { %3010 = vmatprep.subr.bf16.mxu1 %v3009_v4  ;;  %v390_v4 = vld [vmem:[#allocation5 + $0x1b0] sm:$0xff]  ;;  %v395_v5 = vld [vmem:[#allocation5 + $0x1d8] sm:$0xff] }
  0xbe   :  { %v399_v6 = vld [vmem:[#allocation5 + $0x1f8] sm:$0xff]  ;;  %v3047_v7 = vpack.c.bf16 %v390_v4, %v386_v3  ;;  %v685_v13 = vld [vmem:[#allocation10 + $0x28] sm:$0xff] }
  0xbf   :  { %2984 = vmatpush3.bf16.msra.mxu0 %v2981_v43  ;;  %v363_v43 = vld [vmem:[#allocation5 + $0xd8] sm:$0xff]  ;;  %v3049_v8 = vpack.c.bf16 %v399_v6, %v395_v5  ;;  %v689_v24 = vld [vmem:[#allocation10 + $0x48] sm:$0xff] }
  0xc0   :  { %2986 = vmatprep.subr.bf16.mxu0 %v2985_v55  ;;  %3012 = vmatpush1.bf16.msra.mxu1 %v3011_v9  ;;  %v3033_v47 = vpack.c.bf16 %v367_v44, %v363_v43  ;;  %v394_v9 = vld [vmem:[#allocation5 + $0x1d0] sm:$0xff]  ;;  %v683_v14 = vld [vmem:[#allocation10 + $0x18] sm:$0xff]  ;;  %v696_v44 = vld [vmem:[#allocation10 + $0x80] sm:$0xff] }
  0xc1   :  { %3014 = vmatprep.subr.bf16.mxu1 %v3013_v10  ;;  %v398_v10 = vld [vmem:[#allocation5 + $0x1f0] sm:$0xff]  ;;  %v691_v26 = vld [vmem:[#allocation10 + $0x58] sm:$0xff] }
  0xc2   :  { %v3051_v11 = vpack.c.bf16 %v398_v10, %v394_v9  ;;  %v693_v25 = vld [vmem:[#allocation10 + $0x68] sm:$0xff]  ;;  %v695_v27 = vld [vmem:[#allocation10 + $0x78] sm:$0xff]  ;;  %v690_v33 = vld [vmem:[#allocation10 + $0x50] sm:$0xff] }
  0xc3   :  { %2988 = vmatpush3.bf16.msra.mxu0 %v2985_v55  ;;  %v370_v55 = vld [vmem:[#allocation5 + $0x110] sm:$0xff]  ;;  %v3057_v36 = vpack.c.bf16 %v693_v25, %v689_v24  ;;  %v703_v41 = vld [vmem:[#allocation10 + $0xb8] sm:$0xff]  ;;  %v716_v10 = vld [vmem:[#allocation10 + $0x120] sm:$0xff] }
  0xc4   :  { %3022 = vmatprep.subr.bf16.mxu0 %v3021_v0  ;;  %3016 = vmatpush1.bf16.msra.mxu1 %v3015_v15  ;;  %v3039_v59 = vpack.c.bf16 %v374_v56, %v370_v55  ;;  %v391_v0 = vld [vmem:[#allocation5 + $0x1b8] sm:$0xff]  ;;  %v3053_v15 = vpack.c.bf16 %v685_v13, %v681_v12  ;;  %v717_v3 = vld [vmem:[#allocation10 + $0x128] sm:$0xff]  ;;  %v720_v24 = vld [vmem:[#allocation10 + $0x140] sm:$0xff] }
  0xc5   :  { %3018 = vmatprep.subr.bf16.mxu1 %v3017_v16  ;;  %v3045_v2 = vpack.c.bf16 %v391_v0, %v387_v63  ;;  %v687_v16 = vld [vmem:[#allocation10 + $0x38] sm:$0xff]  ;;  %v694_v34 = vld [vmem:[#allocation10 + $0x70] sm:$0xff]  ;;  %v724_v25 = vld [vmem:[#allocation10 + $0x160] sm:$0xff] }
  0xc6   :  { %v3085_v17 = vpack.c.bf16 %v687_v16, %v683_v14  ;;  %v3091_v43 = vpack.c.bf16 %v694_v34, %v690_v33  ;;  %v702_v48 = vld [vmem:[#allocation10 + $0xb0] sm:$0xff]  ;;  %v711_v55 = vld [vmem:[#allocation10 + $0xf8] sm:$0xff]  ;;  %v721_v16 = vld [vmem:[#allocation10 + $0x148] sm:$0xff]  ;;  %v3075_v34 = vpack.c.bf16 %v724_v25, %v720_v24 }
  0xc7   :  { %v706_v61 = vld [vmem:[#allocation10 + $0xd0] sm:$0xff]  ;;  %v715_v4 = vld [vmem:[#allocation10 + $0x118] sm:$0xff] }
  0xc8   :  { %3020 = vmatpush1.bf16.msra.mxu1 %v3019_v19  ;;  %v680_v19 = vld [vmem:[#allocation10] sm:$0xff]  ;;  %v710_v62 = vld [vmem:[#allocation10 + $0xf0] sm:$0xff]  ;;  %v719_v5 = vld [vmem:[#allocation10 + $0x138] sm:$0xff] }
  0xc9   :  { %3054 = vmatprep.subr.bf16.mxu1 %v3053_v15  ;;  %v718_v12 = vld [vmem:[#allocation10 + $0x130] sm:$0xff]  ;;  %v3101_v15 = vpack.c.bf16 %v719_v5, %v715_v4  ;;  %v735_v33 = vld [vmem:[#allocation10 + $0x1b8] sm:$0xff] }
  0xca   :  { %v936_v4 = vld [vmem:[#allocation7 + $0x58] sm:$0xff]  ;;  %v945_v24 = vld [vmem:[#allocation7 + $0xa0] sm:$0xff] }
  0xcb   :  { %v940_v5 = vld [vmem:[#allocation7 + $0x78] sm:$0xff] }
 0x121   :  { %v175_v22 = vpop.permute.xlu1 %174  ;;  %v169_v23 = vpop.permute.xlu0 %168 }
 0x122   :  { %vm191_vm0 = vcmp.eq.s32.totalorder %v166_v21, %v169_v23  ;;  %vm193_vm1 = vcmp.eq.s32.totalorder %v166_v21, %v175_v22  ;;  %v682_v22 = vld [vmem:[#allocation10 + $0x10] sm:$0xff] }
 0x123   :  { %2840 = vmatprep.mubr.msk.f32.mxu0 %vm191_vm0, %v4147_v28  ;;  %v686_v23 = vld [vmem:[#allocation10 + $0x30] sm:$0xff] }
 0x125   :  { %v178_v30 = vpop.permute.xlu1 %177  ;;  %v172_v31 = vpop.permute.xlu0 %171 }
 0x126   :  { %vm192_vm2 = vcmp.eq.s32.totalorder %v166_v21, %v172_v31  ;;  %vm194_vm3 = vcmp.eq.s32.totalorder %v166_v21, %v178_v30  ;;  %v688_v30 = vld [vmem:[#allocation10 + $0x40] sm:$0xff] }
 0x127   :  { %2841 = vmatmul.mubr.msk.f32.vlgmr.msra.gmra.mrb[0].mxu0 %vm192_vm2, %v4147_v28 }
 0x128   :  { %2843 = vmatprep.mubr.msk.f32.mxu0 %vm193_vm1, %v4147_v28  ;;  %3024 = vmatpush1.bf16.msra.mxu0 %v3023_v29  ;;  %v3087_v29 = vpack.c.bf16 %v686_v23, %v682_v22 }
 0x129   :  { %v184_v38 = vpop.permute.xlu1 %183  ;;  %v181_v39 = vpop.permute.xlu0 %180  ;;  %3026 = vmatprep.subr.bf16.mxu0 %v3025_v32  ;;  %v692_v32 = vld [vmem:[#allocation10 + $0x60] sm:$0xff] }
 0x12a   :  { %vm195_vm4 = vcmp.eq.s32.totalorder %v166_v21, %v181_v39  ;;  %vm196_vm5 = vcmp.eq.s32.totalorder %v166_v21, %v184_v38  ;;  %v697_v38 = vld [vmem:[#allocation10 + $0x88] sm:$0xff]  ;;  %v3059_v42 = vpack.c.bf16 %v692_v32, %v688_v30  ;;  %v731_v32 = vld [vmem:[#allocation10 + $0x198] sm:$0xff] }
 0x12b   :  { %2844 = vmatmul.mubr.msk.f32.gmra.mrb[2].mxu0 %vm194_vm3, %v4147_v28  ;;  %v701_v39 = vld [vmem:[#allocation10 + $0xa8] sm:$0xff] }
 0x12c   :  { %2846 = vmatprep.mubr.msk.f32.mxu0 %vm195_vm4, %v4147_v28  ;;  %3028 = vmatpush1.bf16.msra.mxu0 %v3027_v37  ;;  %v3089_v37 = vpack.c.bf16 %v695_v27, %v691_v26  ;;  %v3061_v50 = vpack.c.bf16 %v701_v39, %v697_v38  ;;  %v722_v26 = vld [vmem:[#allocation10 + $0x150] sm:$0xff]  ;;  %v729_v30 = vld [vmem:[#allocation10 + $0x188] sm:$0xff] }
 0x12d   :  { %v187_v46 = vpop.permute.xlu0 %186  ;;  %3030 = vmatprep.subr.bf16.mxu0 %v3029_v40  ;;  %v190_v52 = vpop.permute.xlu1 %189  ;;  %v699_v40 = vld [vmem:[#allocation10 + $0x98] sm:$0xff]  ;;  %v726_v27 = vld [vmem:[#allocation10 + $0x170] sm:$0xff] }
 0x12e   :  { %vm197_vm6 = vcmp.eq.s32.totalorder %v166_v21, %v187_v46  ;;  %vm198_vm7 = vcmp.eq.s32.totalorder %v166_v21, %v190_v52  ;;  %v684_v21 = vld [vmem:[#allocation10 + $0x20] sm:$0xff]  ;;  %v3093_v51 = vpack.c.bf16 %v703_v41, %v699_v40  ;;  %v705_v52 = vld [vmem:[#allocation10 + $0xc8] sm:$0xff]  ;;  %v730_v38 = vld [vmem:[#allocation10 + $0x190] sm:$0xff]  ;;  %v3109_v41 = vpack.c.bf16 %v735_v33, %v731_v32 }
 0x12f   :  { %2847 = vmatmul.mubr.msk.f32.gmra.mrb[4].mxu0 %vm196_vm5, %v4147_v28  ;;  %v700_v46 = vld [vmem:[#allocation10 + $0xa0] sm:$0xff]  ;;  %v734_v39 = vld [vmem:[#allocation10 + $0x1b0] sm:$0xff] }
 0x130   :  { %2849 = vmatprep.mubr.msk.f32.mxu0 %vm197_vm6, %v4147_v28  ;;  %3032 = vmatpush1.bf16.msra.mxu0 %v3031_v45  ;;  %v3063_v56 = vpack.c.bf16 %v700_v46, %v696_v44  ;;  %v739_v44 = vld [vmem:[#allocation10 + $0x1d8] sm:$0xff] }
 0x131   :  { %3034 = vmatprep.subr.bf16.mxu0 %v3033_v47  ;;  %v698_v47 = vld [vmem:[#allocation10 + $0x90] sm:$0xff] }
 0x132   :  { %v3095_v57 = vpack.c.bf16 %v702_v48, %v698_v47  ;;  %v3111_v47 = vpack.c.bf16 %v734_v39, %v730_v38  ;;  %v736_v48 = vld [vmem:[#allocation10 + $0x1c0] sm:$0xff]  ;;  %v951_v38 = vld [vmem:[#allocation7 + $0xd0] sm:$0xff] }
 0x133   :  { %2850 = vmatmul.mubr.msk.f32.gmra.mrb[6].mxu0 %vm198_vm7, %v4147_v28  ;;  %v3055_v28 = vpack.c.bf16 %v684_v21, %v680_v19  ;;  %v723_v19 = vld [vmem:[#allocation10 + $0x158] sm:$0xff]  ;;  %v955_v39 = vld [vmem:[#allocation7 + $0xf0] sm:$0xff] }
 0x134   :  { %3036 = vmatpush1.bf16.msra.mxu0 %v3035_v53  ;;  %599 = vmatprep.mubr.f32.mxu0 %v4148_v18  ;;  %v709_v53 = vld [vmem:[#allocation10 + $0xe8] sm:$0xff]  ;;  %v727_v21 = vld [vmem:[#allocation10 + $0x178] sm:$0xff] }
 0x135   :  { %3038 = vmatprep.subr.bf16.mxu0 %v3037_v54  ;;  %v707_v54 = vld [vmem:[#allocation10 + $0xd8] sm:$0xff]  ;;  %v3065_v0 = vpack.c.bf16 %v709_v53, %v705_v52 }
 0x138   :  { %3040 = vmatpush1.bf16.msra.mxu0 %v3039_v59 }
 0x139   :  { %3042 = vmatprep.subr.bf16.mxu0 %v3041_v60  ;;  %v708_v60 = vld [vmem:[#allocation10 + $0xe0] sm:$0xff] }
 0x13a   :  { %v3067_v6 = vpack.c.bf16 %v708_v60, %v704_v58  ;;  %v925_v60 = vld [vmem:[#allocation7] sm:$0xff] }
 0x13c   :  { %3044 = vmatpush1.bf16.msra.mxu0 %v3043_v1  ;;  %v3097_v1 = vpack.c.bf16 %v711_v55, %v707_v54  ;;  %v926_v54 = vld [vmem:[#allocation7 + $0x8] sm:$0xff] }
 0x13d   :  { %3046 = vmatprep.subr.bf16.mxu0 %v3045_v2  ;;  %v713_v2 = vld [vmem:[#allocation10 + $0x108] sm:$0xff] }
 0x13e   :  { %v3069_v14 = vpack.c.bf16 %v717_v3, %v713_v2  ;;  %v930_v55 = vld [vmem:[#allocation7 + $0x28] sm:$0xff] }
 0x13f   :  { %v938_v3 = vld [vmem:[#allocation7 + $0x68] sm:$0xff] }
 0x140   :  { %3048 = vmatpush1.bf16.msra.mxu0 %v3047_v7  ;;  %v3099_v7 = vpack.c.bf16 %v710_v62, %v706_v61  ;;  %v929_v61 = vld [vmem:[#allocation7 + $0x20] sm:$0xff]  ;;  %v927_v62 = vld [vmem:[#allocation7 + $0x10] sm:$0xff] }
 0x141   :  { %3050 = vmatprep.subr.bf16.mxu0 %v3049_v8  ;;  %v712_v8 = vld [vmem:[#allocation10 + $0x100] sm:$0xff] }
 0x142   :  { %v3071_v22 = vpack.c.bf16 %v716_v10, %v712_v8  ;;  %v933_v8 = vld [vmem:[#allocation7 + $0x40] sm:$0xff] }
 0x143   :  { %v937_v10 = vld [vmem:[#allocation7 + $0x60] sm:$0xff] }
 0x144   :  { %3052 = vmatpush1.bf16.msra.mxu0 %v3051_v11  ;;  %v714_v11 = vld [vmem:[#allocation10 + $0x110] sm:$0xff] }
 0x145   :  { %3086 = vmatprep.subr.bf16.mxu0 %v3085_v17  ;;  %v725_v17 = vld [vmem:[#allocation10 + $0x168] sm:$0xff]  ;;  %v3103_v23 = vpack.c.bf16 %v718_v12, %v714_v11  ;;  %v4407_v12 = vpack.c.bf16 %v940_v5, %v936_v4  ;;  %v976_v4 = vld [vmem:[#allocation7 + $0x198] sm:$0xff] }
 0x146   :  { %v980_v5 = vld [vmem:[#allocation7 + $0x1b8] sm:$0xff] }
 0x1fa   :  { %v2842_v31 = vpop.f32.mrb[0].mxu0 }
 0x1fb   :  { %v297_v35 = vpop.f32.mrb[1].mxu0 }
 0x1fc   :  { %487 = vmatmul.mubr.f32.vlgmr.msra.gmra.mrb[0].mxu1 %v297_v35  ;;  %600 = vmatmul.mubr.f32.vlgmr.msra.gmra.mrb[8].mxu0 %v297_v35  ;;  %v3107_v35 = vpack.c.bf16 %v726_v27, %v722_v26  ;;  %v943_v27 = vld [vmem:[#allocation7 + $0x90] sm:$0xff] }
 0x1fd   :  { %3056 = vmatpush1.bf16.msra.mxu1 %v3055_v28  ;;  %3088 = vmatpush1.bf16.msra.mxu0 %v3087_v29  ;;  %v3073_v28 = vpack.c.bf16 %v725_v17, %v721_v16  ;;  %v3105_v29 = vpack.c.bf16 %v727_v21, %v723_v19  ;;  %v946_v16 = vld [vmem:[#allocation7 + $0xa8] sm:$0xff]  ;;  %v944_v17 = vld [vmem:[#allocation7 + $0x98] sm:$0xff]  ;;  %v4415_v21 = vpack.c.bf16 %v937_v10, %v933_v8 }
 0x1fe   :  { %v2845_v45 = vpop.f32.mrb[2].mxu0  ;;  %492 = vmatprep.mubr.f32.mxu1 %v4148_v18  ;;  %605 = vmatprep.mubr.f32.mxu0 %v4148_v18  ;;  %v948_v19 = vld [vmem:[#allocation7 + $0xb8] sm:$0xff] }
 0x1ff   :  { %v307_v49 = vpop.f32.mrb[3].mxu0  ;;  %3058 = vmatprep.subr.bf16.mxu1 %v3057_v36  ;;  %3090 = vmatprep.subr.bf16.mxu0 %v3089_v37  ;;  %v728_v36 = vld [vmem:[#allocation10 + $0x180] sm:$0xff]  ;;  %v4423_v26 = vpack.c.bf16 %v948_v19, %v944_v17  ;;  %v975_v17 = vld [vmem:[#allocation7 + $0x190] sm:$0xff] }
 0x200   :  { %493 = vmatmul.mubr.f32.gmra.mrb[2].mxu1 %v2842_v31  ;;  %606 = vmatmul.mubr.f32.gmra.mrb[10].mxu0 %v2842_v31  ;;  %v733_v31 = vld [vmem:[#allocation10 + $0x1a8] sm:$0xff]  ;;  %v732_v37 = vld [vmem:[#allocation10 + $0x1a0] sm:$0xff] }
 0x201   :  { %3060 = vmatpush1.bf16.msra.mxu1 %v3059_v42  ;;  %3092 = vmatpush1.bf16.msra.mxu0 %v3091_v43  ;;  %v3077_v40 = vpack.c.bf16 %v733_v31, %v729_v30  ;;  %v737_v42 = vld [vmem:[#allocation10 + $0x1c8] sm:$0xff]  ;;  %v3079_v46 = vpack.c.bf16 %v732_v37, %v728_v36  ;;  %v952_v30 = vld [vmem:[#allocation7 + $0xd8] sm:$0xff] }
 0x202   :  { %v4371_v59 = vpop.f32.mrb[4].mxu0  ;;  %498 = vmatprep.mubr.f32.mxu1 %v4148_v18  ;;  %611 = vmatprep.mubr.f32.mxu0 %v4148_v18  ;;  %v741_v43 = vld [vmem:[#allocation10 + $0x1e8] sm:$0xff]  ;;  %v956_v31 = vld [vmem:[#allocation7 + $0xf8] sm:$0xff] }
 0x203   :  { %v317_v63 = vpop.f32.mrb[5].mxu0  ;;  %3062 = vmatprep.subr.bf16.mxu1 %v3061_v50  ;;  %3094 = vmatprep.subr.bf16.mxu0 %v3093_v51  ;;  %v738_v50 = vld [vmem:[#allocation10 + $0x1d0] sm:$0xff]  ;;  %v3081_v52 = vpack.c.bf16 %v741_v43, %v737_v42  ;;  %v4437_v37 = vpack.c.bf16 %v956_v31, %v952_v30  ;;  %v981_v30 = vld [vmem:[#allocation7 + $0x1c0] sm:$0xff] }
 0x204   :  { %499 = vmatmul.mubr.f32.gmra.mrb[4].mxu1 %v307_v49  ;;  %612 = vmatmul.mubr.f32.gmra.mrb[12].mxu0 %v307_v49  ;;  %v740_v49 = vld [vmem:[#allocation10 + $0x1e0] sm:$0xff]  ;;  %v742_v51 = vld [vmem:[#allocation10 + $0x1f0] sm:$0xff] }
 0x205   :  { %3064 = vmatpush1.bf16.msra.mxu1 %v3063_v56  ;;  %3096 = vmatpush1.bf16.msra.mxu0 %v3095_v57  ;;  %v928_v56 = vld [vmem:[#allocation7 + $0x18] sm:$0xff]  ;;  %v3083_v58 = vpack.c.bf16 %v740_v49, %v736_v48  ;;  %v979_v19 = vld [vmem:[#allocation7 + $0x1b0] sm:$0xff] }
 0x206   :  { %v4375_v9 = vpop.f32.mrb[6].mxu0  ;;  %504 = vmatprep.mubr.f32.mxu1 %v4148_v18  ;;  %617 = vmatprep.mubr.f32.mxu0 %v4148_v18  ;;  %v932_v57 = vld [vmem:[#allocation7 + $0x38] sm:$0xff] }
 0x207   :  { %v4379_v13 = vpop.f32.mrb[7].mxu0  ;;  %3066 = vmatprep.subr.bf16.mxu1 %v3065_v0  ;;  %3098 = vmatprep.subr.bf16.mxu0 %v3097_v1  ;;  %v934_v0 = vld [vmem:[#allocation7 + $0x48] sm:$0xff]  ;;  %v4393_v1 = vpack.c.bf16 %v930_v55, %v926_v54  ;;  %v4395_v2 = vpack.c.bf16 %v932_v57, %v928_v56  ;;  %v960_v42 = vld [vmem:[#allocation7 + $0x118] sm:$0xff] }
 0x208   :  { %505 = vmatmul.mubr.f32.gmra.mrb[6].mxu1 %v2845_v45  ;;  %618 = vmatmul.mubr.f32.gmra.mrb[14].mxu0 %v2845_v45  ;;  %v743_v45 = vld [vmem:[#allocation10 + $0x1f8] sm:$0xff]  ;;  %v4405_v11 = vpack.c.bf16 %v938_v3, %v934_v0  ;;  %v974_v0 = vld [vmem:[#allocation7 + $0x188] sm:$0xff] }
 0x209   :  { %3068 = vmatpush1.bf16.msra.mxu1 %v3067_v6  ;;  %3100 = vmatpush1.bf16.msra.mxu0 %v3099_v7  ;;  %v3113_v53 = vpack.c.bf16 %v743_v45, %v739_v44  ;;  %v4399_v6 = vpack.c.bf16 %v929_v61, %v925_v60  ;;  %v964_v43 = vld [vmem:[#allocation7 + $0x138] sm:$0xff]  ;;  %v4443_v45 = vpack.c.bf16 %v955_v39, %v951_v38  ;;  %v978_v3 = vld [vmem:[#allocation7 + $0x1a8] sm:$0xff]  ;;  %v983_v38 = vld [vmem:[#allocation7 + $0x1d0] sm:$0xff] }
 0x20a   :  { %510 = vmatprep.mubr.f32.mxu1 %v4148_v18  ;;  %623 = vmatprep.mubr.f32.mxu0 %v4148_v18  ;;  %v4449_v49 = vpack.c.bf16 %v964_v43, %v960_v42  ;;  %v968_v54 = vld [vmem:[#allocation7 + $0x158] sm:$0xff]  ;;  %v987_v39 = vld [vmem:[#allocation7 + $0x1f0] sm:$0xff]  ;;  %v403_v42 = vshrl.u32 %v165_v20, 7 }
 0x20b   :  { %3070 = vmatprep.subr.bf16.mxu1 %v3069_v14  ;;  %3102 = vmatprep.subr.bf16.mxu0 %v3101_v15  ;;  %v939_v14 = vld [vmem:[#allocation7 + $0x70] sm:$0xff]  ;;  %v942_v15 = vld [vmem:[#allocation7 + $0x88] sm:$0xff]  ;;  %v972_v55 = vld [vmem:[#allocation7 + $0x178] sm:$0xff] }
 0x20c   :  { %511 = vmatmul.mubr.f32.gmra.mrb[8].mxu1 %v317_v63  ;;  %624 = vmatmul.mubr.f32.gmra.mrb[16].mxu0 %v317_v63  ;;  %v931_v63 = vld [vmem:[#allocation7 + $0x30] sm:$0xff]  ;;  %v4421_v25 = vpack.c.bf16 %v946_v16, %v942_v15  ;;  %v4461_v61 = vpack.c.bf16 %v972_v55, %v968_v54  ;;  %v4471_v15 = vpack.c.bf16 %v978_v3, %v974_v0  ;;  %v404_v43 = vsub.s32 0, %v403_v42 }
 0x20d   :  { %3072 = vmatpush1.bf16.msra.mxu1 %v3071_v22  ;;  %3104 = vmatpush1.bf16.msra.mxu0 %v3103_v23  ;;  %v4401_v7 = vpack.c.bf16 %v931_v63, %v927_v62  ;;  %v941_v23 = vld [vmem:[#allocation7 + $0x80] sm:$0xff]  ;;  %v967_v62 = vld [vmem:[#allocation7 + $0x150] sm:$0xff]  ;;  %v4473_v16 = vpack.c.bf16 %v980_v5, %v976_v4 }
 0x20e   :  { %516 = vmatprep.mubr.f32.mxu1 %v4148_v18  ;;  %629 = vmatprep.mubr.f32.mxu0 %v4148_v18  ;;  %v4429_v32 = vpack.c.bf16 %v945_v24, %v941_v23  ;;  %v971_v63 = vld [vmem:[#allocation7 + $0x170] sm:$0xff]  ;;  %v982_v23 = vld [vmem:[#allocation7 + $0x1c8] sm:$0xff] }
 0x20f   :  { %3074 = vmatprep.subr.bf16.mxu1 %v3073_v28  ;;  %3106 = vmatprep.subr.bf16.mxu0 %v3105_v29  ;;  %v950_v28 = vld [vmem:[#allocation7 + $0xc8] sm:$0xff]  ;;  %v4467_v10 = vpack.c.bf16 %v971_v63, %v967_v62 }
 0x210   :  { %517 = vmatmul.mubr.f32.gmra.mrb[10].mxu1 %v4371_v59  ;;  %630 = vmatmul.mubr.f32.gmra.mrb[18].mxu0 %v4371_v59  ;;  %v3115_v59 = vpack.c.bf16 %v742_v51, %v738_v50  ;;  %v954_v29 = vld [vmem:[#allocation7 + $0xe8] sm:$0xff]  ;;  %v959_v50 = vld [vmem:[#allocation7 + $0x110] sm:$0xff] }
 0x211   :  { %3076 = vmatpush1.bf16.msra.mxu1 %v3075_v34  ;;  %3108 = vmatpush1.bf16.msra.mxu0 %v3107_v35  ;;  %v949_v34 = vld [vmem:[#allocation7 + $0xc0] sm:$0xff]  ;;  %v4435_v36 = vpack.c.bf16 %v954_v29, %v950_v28  ;;  %v963_v51 = vld [vmem:[#allocation7 + $0x130] sm:$0xff]  ;;  %v986_v24 = vld [vmem:[#allocation7 + $0x1e8] sm:$0xff]  ;;  %v4479_v29 = vpack.c.bf16 %v979_v19, %v975_v17  ;;  %v408_v17 = vsub.s32 1, %v403_v42 }
 0x212   :  { %522 = vmatprep.mubr.f32.mxu1 %v4148_v18  ;;  %635 = vmatprep.mubr.f32.mxu0 %v4148_v18  ;;  %v953_v35 = vld [vmem:[#allocation7 + $0xe0] sm:$0xff]  ;;  %v4455_v57 = vpack.c.bf16 %v963_v51, %v959_v50  ;;  %v4483_v31 = vpack.c.bf16 %v986_v24, %v982_v23  ;;  %v416_v50 = vsub.s32 3, %v403_v42 }
 0x213   :  { %3078 = vmatprep.subr.bf16.mxu1 %v3077_v40  ;;  %3110 = vmatprep.subr.bf16.mxu0 %v3109_v41  ;;  %v958_v40 = vld [vmem:[#allocation7 + $0x108] sm:$0xff]  ;;  %v4441_v44 = vpack.c.bf16 %v953_v35, %v949_v34  ;;  %v985_v35 = vld [vmem:[#allocation7 + $0x1e0] sm:$0xff] }
 0x214   :  { %523 = vmatmul.mubr.f32.gmra.mrb[12].mxu1 %v4379_v13  ;;  %636 = vmatmul.mubr.f32.gmra.mrb[20].mxu0 %v4379_v13  ;;  %v935_v13 = vld [vmem:[#allocation7 + $0x50] sm:$0xff]  ;;  %v962_v41 = vld [vmem:[#allocation7 + $0x128] sm:$0xff] }
 0x215   :  { %3080 = vmatpush1.bf16.msra.mxu1 %v3079_v46  ;;  %3112 = vmatpush1.bf16.msra.mxu0 %v3111_v47  ;;  %v4417_v22 = vpack.c.bf16 %v939_v14, %v935_v13  ;;  %v957_v46 = vld [vmem:[#allocation7 + $0x100] sm:$0xff]  ;;  %v4447_v48 = vpack.c.bf16 %v962_v41, %v958_v40  ;;  %v4489_v40 = vpack.c.bf16 %v985_v35, %v981_v30 }
 0x216   :  { %528 = vmatprep.mubr.f32.mxu1 %v4148_v18  ;;  %641 = vmatprep.mubr.f32.mxu0 %v4148_v18  ;;  %v961_v47 = vld [vmem:[#allocation7 + $0x120] sm:$0xff]  ;;  %v4491_v41 = vpack.c.bf16 %v987_v39, %v983_v38 }
 0x217   :  { %3082 = vmatprep.subr.bf16.mxu1 %v3081_v52  ;;  %3114 = vmatprep.subr.bf16.mxu0 %v3113_v53  ;;  %v966_v52 = vld [vmem:[#allocation7 + $0x148] sm:$0xff]  ;;  %v4453_v56 = vpack.c.bf16 %v961_v47, %v957_v46  ;;  %v973_v13 = vld [vmem:[#allocation7 + $0x180] sm:$0xff]  ;;  %v412_v46 = vsub.s32 2, %v403_v42 }
 0x218   :  { %529 = vmatmul.mubr.f32.gmra.mrb[14].mxu1 %v4375_v9  ;;  %642 = vmatmul.mubr.f32.gmra.mrb[22].mxu0 %v4375_v9  ;;  %v970_v53 = vld [vmem:[#allocation7 + $0x168] sm:$0xff]  ;;  %v977_v14 = vld [vmem:[#allocation7 + $0x1a0] sm:$0xff] }
 0x219   :  { %3084 = vmatpush1.bf16.msra.mxu1 %v3083_v58  ;;  %3116 = vmatpush1.bf16.msra.mxu0 %v3115_v59  ;;  %v965_v58 = vld [vmem:[#allocation7 + $0x140] sm:$0xff]  ;;  %v4459_v60 = vpack.c.bf16 %v970_v53, %v966_v52  ;;  %v4477_v28 = vpack.c.bf16 %v977_v14, %v973_v13 }
 0x21a   :  { %825 = vmatprep.mubr.f32.mxu1 %v4148_v18  ;;  %895 = vmatprep.mubr.f32.mxu0 %v4148_v18  ;;  %v969_v59 = vld [vmem:[#allocation7 + $0x160] sm:$0xff] }
 0x21b   :  { %3118 = vmatprep.subr.bf16.mxu1 %v4393_v1  ;;  %3150 = vmatprep.subr.bf16.mxu0 %v4395_v2  ;;  %v4465_v8 = vpack.c.bf16 %v969_v59, %v965_v58  ;;  %v744_v47 = vld [vmem:[#allocation11] sm:$0xf]  ;;  %v400_v14 = vld [vmem:[#allocation8] sm:$0xf] }
 0x21c   :  { %826 = vmatmul.mubr.f32.vlgmr.msra.gmra.mrb[16].mxu1 %v4375_v9  ;;  %896 = vmatmul.mubr.f32.vlgmr.msra.gmra.mrb[24].mxu0 %v4375_v9  ;;  %v947_v9 = vld [vmem:[#allocation7 + $0xb0] sm:$0xff]  ;;  %v749_v51 = vrot.slane %v744_v47, %v404_v43  ;;  %v753_v52 = vrot.slane %v744_v47, %v412_v46  ;;  %v757_v53 = vrot.slane %v744_v47, %v416_v50 }
 0x21d   :  { %3120 = vmatpush1.bf16.msra.mxu1 %v4399_v6  ;;  %3152 = vmatpush1.bf16.msra.mxu0 %v4401_v7  ;;  %v4431_v33 = vpack.c.bf16 %v947_v9, %v943_v27  ;;  %v984_v27 = vld [vmem:[#allocation7 + $0x1d8] sm:$0xff]  ;;  %v4538_v30 = vrot.slane %v400_v14, %v408_v17 }
 0x21e   :  { %3122 = vmatprep.subr.bf16.mxu1 %v4405_v11  ;;  %3154 = vmatprep.subr.bf16.mxu0 %v4407_v12  ;;  %v988_v9 = vld [vmem:[#allocation7 + $0x1f8] sm:$0xff] }
 0x21f   :  { %1053 = vmatprep.mubr.f32.mxu1 %v4148_v18  ;;  %1124 = vmatprep.mubr.f32.mxu0 %v4148_v18  ;;  %v4485_v34 = vpack.c.bf16 %v988_v9, %v984_v27  ;;  %v4536_v27 = vrot.slane %v400_v14, %v404_v43 }
 0x221   :  { %3124 = vmatpush1.bf16.msra.mxu1 %v4415_v21  ;;  %3156 = vmatpush1.bf16.msra.mxu0 %v4417_v22 }
 0x222   :  { %3126 = vmatprep.subr.bf16.mxu1 %v4421_v25  ;;  %3158 = vmatprep.subr.bf16.mxu0 %v4423_v26 }
 0x225   :  { %3128 = vmatpush1.bf16.msra.mxu1 %v4429_v32  ;;  %3160 = vmatpush1.bf16.msra.mxu0 %v4431_v33 }
 0x226   :  { %3130 = vmatprep.subr.bf16.mxu1 %v4435_v36  ;;  %3162 = vmatprep.subr.bf16.mxu0 %v4437_v37 }
 0x229   :  { %3132 = vmatpush1.bf16.msra.mxu1 %v4441_v44  ;;  %3164 = vmatpush1.bf16.msra.mxu0 %v4443_v45 }
 0x22a   :  { %3134 = vmatprep.subr.bf16.mxu1 %v4447_v48  ;;  %3166 = vmatprep.subr.bf16.mxu0 %v4449_v49 }
 0x22d   :  { %3136 = vmatpush1.bf16.msra.mxu1 %v4453_v56  ;;  %3168 = vmatpush1.bf16.msra.mxu0 %v4455_v57 }
 0x22e   :  { %3138 = vmatprep.subr.bf16.mxu1 %v4459_v60  ;;  %3170 = vmatprep.subr.bf16.mxu0 %v4461_v61 }
 0x231   :  { %3140 = vmatpush1.bf16.msra.mxu1 %v4465_v8  ;;  %3172 = vmatpush1.bf16.msra.mxu0 %v4467_v10 }
 0x232   :  { %3142 = vmatprep.subr.bf16.mxu1 %v4471_v15  ;;  %3174 = vmatprep.subr.bf16.mxu0 %v4473_v16 }
 0x235   :  { %3144 = vmatpush1.bf16.msra.mxu1 %v4477_v28  ;;  %3176 = vmatpush1.bf16.msra.mxu0 %v4479_v29 }
 0x236   :  { %3146 = vmatprep.subr.bf16.mxu1 %v4483_v31  ;;  %3178 = vmatprep.subr.bf16.mxu0 %v4485_v34 }
 0x239   :  { %3148 = vmatpush1.bf16.msra.mxu1 %v4489_v40  ;;  %3180 = vmatpush1.bf16.msra.mxu0 %v4491_v41 }
 0x23a   :  { %3182 = vmatprep.subr.bf16.mxu1 %v4393_v1  ;;  %3214 = vmatprep.subr.bf16.mxu0 %v4395_v2 }
 0x23c   :  { %1054 = vmatmul.mubr.f32.vlgmr.msra.gmra.mrb[0].mxu1 %v4148_v18  ;;  %1125 = vmatmul.mubr.f32.vlgmr.msra.gmra.mrb[8].mxu0 %v4148_v18 }
 0x23d   :  { %3184 = vmatpush1.bf16.msra.mxu1 %v4399_v6  ;;  %3216 = vmatpush1.bf16.msra.mxu0 %v4401_v7 }
 0x23e   :  { %3186 = vmatprep.subr.bf16.mxu1 %v4405_v11  ;;  %3218 = vmatprep.subr.bf16.mxu0 %v4407_v12 }
 0x23f   :  { %1230 = vmatprep.mubr.f32.mxu1 %v4148_v18  ;;  %1301 = vmatprep.mubr.f32.mxu0 %v4148_v18 }
 0x241   :  { %3188 = vmatpush1.bf16.msra.mxu1 %v4415_v21  ;;  %3220 = vmatpush1.bf16.msra.mxu0 %v4417_v22 }
 0x242   :  { %3190 = vmatprep.subr.bf16.mxu1 %v4421_v25  ;;  %3222 = vmatprep.subr.bf16.mxu0 %v4423_v26 }
 0x245   :  { %3192 = vmatpush1.bf16.msra.mxu1 %v4429_v32  ;;  %3224 = vmatpush1.bf16.msra.mxu0 %v4431_v33 }
 0x246   :  { %3194 = vmatprep.subr.bf16.mxu1 %v4435_v36  ;;  %3226 = vmatprep.subr.bf16.mxu0 %v4437_v37 }
 0x249   :  { %3196 = vmatpush1.bf16.msra.mxu1 %v4441_v44  ;;  %3228 = vmatpush1.bf16.msra.mxu0 %v4443_v45 }
 0x24a   :  { %3198 = vmatprep.subr.bf16.mxu1 %v4447_v48  ;;  %3230 = vmatprep.subr.bf16.mxu0 %v4449_v49 }
 0x24d   :  { %3200 = vmatpush1.bf16.msra.mxu1 %v4453_v56  ;;  %3232 = vmatpush1.bf16.msra.mxu0 %v4455_v57 }
 0x24e   :  { %3202 = vmatprep.subr.bf16.mxu1 %v4459_v60  ;;  %3234 = vmatprep.subr.bf16.mxu0 %v4461_v61 }
 0x251   :  { %3204 = vmatpush1.bf16.msra.mxu1 %v4465_v8  ;;  %3236 = vmatpush1.bf16.msra.mxu0 %v4467_v10 }
 0x252   :  { %3206 = vmatprep.subr.bf16.mxu1 %v4471_v15  ;;  %3238 = vmatprep.subr.bf16.mxu0 %v4473_v16 }
 0x255   :  { %3208 = vmatpush1.bf16.msra.mxu1 %v4477_v28  ;;  %3240 = vmatpush1.bf16.msra.mxu0 %v4479_v29 }
 0x256   :  { %3210 = vmatprep.subr.bf16.mxu1 %v4483_v31  ;;  %3242 = vmatprep.subr.bf16.mxu0 %v4485_v34 }
 0x259   :  { %3212 = vmatpush1.bf16.msra.mxu1 %v4489_v40  ;;  %3244 = vmatpush1.bf16.msra.mxu0 %v4491_v41 }
 0x25a   :  { %3246 = vmatprep.subr.bf16.mxu1 %v4393_v1  ;;  %3278 = vmatprep.subr.bf16.mxu0 %v4395_v2 }
 0x2ef   :  { %v827_v54 = vpop.f32.mrb[16].mxu1  ;;  %v897_v55 = vpop.f32.mrb[24].mxu0 }
 0x2f0   :  { %v828_v58 = vadd.f32 %v827_v54, %v749_v51  ;;  %v898_v59 = vadd.f32 %v897_v55, %v753_v52  ;;  %v829_v62 = vpop.f32.mrb[17].mxu1  ;;  %v899_v63 = vpop.f32.mrb[25].mxu0  ;;  %v4542_v54 = vrot.slane %v400_v14, %v412_v46  ;;  %v4544_v55 = vrot.slane %v400_v14, %v416_v50 }
 0x2f1   :  { %v900_v0 = vadd.f32 %v899_v63, %v757_v53 }
 0x2f2   :  { %v2705_v3 = vmul.f32 -1.442695, %v828_v58  ;;  %v2706_v4 = vmul.f32 -1.442695, %v898_v59 }
 0x2f4   :  { %3785 = vpow2.f32 %v2705_v3 }
 0x2f5   :  { %3787 = vpow2.f32 %v2706_v4 }
 0x2f6   :  { %3789 = vtanh.f32 %v900_v0 }
 0x2fe   :  { %v3786_v5 = vpop.eup %3785 }
 0x2ff   :  { %v908_v20 = vadd.f32 1.0, %v3786_v5  ;;  %v3788_v13 = vpop.eup %3787 }
 0x300   :  { %v909_v19 = vadd.f32 1.0, %v3788_v13  ;;  %v3790_v23 = vpop.eup %3789 }
 0x301   :  { %3791 = vrcp.f32 %v908_v20 }
 0x302   :  { %3793 = vrcp.f32 %v909_v19 }
 0x30b   :  { %v3792_v24 = vpop.eup %3791 }
 0x30c   :  { %v915_v9 = vmul.f32 %v3792_v24, %v3790_v23  ;;  %v3794_v43 = vpop.eup %3793 }
 0x30e   :  { %3795 = vtanh.f32 %v915_v9 }
 0x30f   :  { %v1055_v35 = vpop.f32.mrb[0].mxu1  ;;  %v1126_v38 = vpop.f32.mrb[8].mxu0 }
 0x310   :  { %v3701_v39 = vadd.f32 %v1055_v35, %v4536_v27  ;;  %v1057_v47 = vpop.f32.mrb[1].mxu1  ;;  %v1128_v51 = vpop.f32.mrb[9].mxu0  ;;  %v3717_v59 = vadd.f32 %v1126_v38, %v4542_v54 }
 0x311   :  { %v3702_v52 = vadd.f32 %v1057_v47, %v4538_v30  ;;  %v3718_v63 = vadd.f32 %v1128_v51, %v4544_v55 }
 0x312   :  { %v2707_v53 = vmul.f32 -1.442695, %v3701_v39  ;;  %v2709_v0 = vmul.f32 -1.442695, %v3717_v59 }
 0x313   :  { %v2708_v42 = vmul.f32 -1.442695, %v3702_v52 }
 0x314   :  { %3797 = vpow2.f32 %v2707_v53 }
 0x315   :  { %3799 = vpow2.f32 %v2708_v42 }
 0x316   :  { %3801 = vtanh.f32 %v3718_v63 }
 0x317   :  { %3803 = vpow2.f32 %v2709_v0 }
 0x318   :  { %v3796_v58 = vpop.eup %3795 }
 0x319   :  { %v4547_v62 = vmul.f32 %v3796_v58, %v3794_v43 }
 0x31e   :  { %v3798_v3 = vpop.eup %3797 }
 0x31f   :  { %v1144_v4 = vadd.f32 1.0, %v3798_v3  ;;  %v3800_v5 = vpop.eup %3799 }
 0x320   :  { %v1145_v46 = vadd.f32 1.0, %v3800_v5  ;;  %v3802_v20 = vpop.eup %3801 }
 0x321   :  { %3805 = vrcp.f32 %v1144_v4  ;;  %v3804_v13 = vpop.eup %3803 }
 0x322   :  { %3807 = vrcp.f32 %v1145_v46  ;;  %v1146_v19 = vadd.f32 1.0, %v3804_v13 }
 0x324   :  { %3809 = vrcp.f32 %v1146_v19 }
 0x32b   :  { %v3806_v50 = vpop.eup %3805 }
 0x32c   :  { %v1155_v14 = vmul.f32 %v3806_v50, %v3802_v20  ;;  %v3808_v17 = vpop.eup %3807 }
 0x32d   :  { %v1154_v23 = vmul.f32 0.0, %v3808_v17 }
 0x32e   :  { %v3810_v9 = vpop.eup %3809 }
 0x32f   :  { %v4550_v24 = vadd.f32 %v1155_v14, %v1154_v23 }
 0x331   :  { %3811 = vtanh.f32 %v4550_v24 }
 0x33b   :  { %v3812_v35 = vpop.eup %3811 }
 0x33c   :  { %v1158_v38 = vmul.f32 %v3812_v35, %v3810_v9 }
 0x33e   :  { %1231 = vmatmul.mubr.f32.vlgmr.msra.gmra.mrb[2].mxu1 %v1158_v38  ;;  %1302 = vmatmul.mubr.f32.vlgmr.msra.gmra.mrb[10].mxu0 %v1158_v38 }
 0x33f   :  { %3248 = vmatpush1.bf16.msra.mxu1 %v4399_v6  ;;  %3280 = vmatpush1.bf16.msra.mxu0 %v4401_v7 }
 0x340   :  { %3250 = vmatprep.subr.bf16.mxu1 %v4405_v11  ;;  %3282 = vmatprep.subr.bf16.mxu0 %v4407_v12 }
 0x341   :  { %1407 = vmatprep.mubr.f32.mxu1 %v4148_v18  ;;  %1478 = vmatprep.mubr.f32.mxu0 %v4148_v18 }
 0x343   :  { %3252 = vmatpush1.bf16.msra.mxu1 %v4415_v21  ;;  %3284 = vmatpush1.bf16.msra.mxu0 %v4417_v22 }
 0x344   :  { %3254 = vmatprep.subr.bf16.mxu1 %v4421_v25  ;;  %3286 = vmatprep.subr.bf16.mxu0 %v4423_v26 }
 0x347   :  { %3256 = vmatpush1.bf16.msra.mxu1 %v4429_v32  ;;  %3288 = vmatpush1.bf16.msra.mxu0 %v4431_v33 }
 0x348   :  { %3258 = vmatprep.subr.bf16.mxu1 %v4435_v36  ;;  %3290 = vmatprep.subr.bf16.mxu0 %v4437_v37 }
 0x34b   :  { %3260 = vmatpush1.bf16.msra.mxu1 %v4441_v44  ;;  %3292 = vmatpush1.bf16.msra.mxu0 %v4443_v45 }
 0x34c   :  { %3262 = vmatprep.subr.bf16.mxu1 %v4447_v48  ;;  %3294 = vmatprep.subr.bf16.mxu0 %v4449_v49 }
 0x34f   :  { %3264 = vmatpush1.bf16.msra.mxu1 %v4453_v56  ;;  %3296 = vmatpush1.bf16.msra.mxu0 %v4455_v57 }
 0x350   :  { %3266 = vmatprep.subr.bf16.mxu1 %v4459_v60  ;;  %3298 = vmatprep.subr.bf16.mxu0 %v4461_v61 }
 0x353   :  { %3268 = vmatpush1.bf16.msra.mxu1 %v4465_v8  ;;  %3300 = vmatpush1.bf16.msra.mxu0 %v4467_v10 }
 0x354   :  { %3270 = vmatprep.subr.bf16.mxu1 %v4471_v15  ;;  %3302 = vmatprep.subr.bf16.mxu0 %v4473_v16 }
 0x357   :  { %3272 = vmatpush1.bf16.msra.mxu1 %v4477_v28  ;;  %3304 = vmatpush1.bf16.msra.mxu0 %v4479_v29 }
 0x358   :  { %3274 = vmatprep.subr.bf16.mxu1 %v4483_v31  ;;  %3306 = vmatprep.subr.bf16.mxu0 %v4485_v34 }
 0x35b   :  { %3276 = vmatpush1.bf16.msra.mxu1 %v4489_v40  ;;  %3308 = vmatpush1.bf16.msra.mxu0 %v4491_v41 }
 0x35c   :  { %3310 = vmatprep.subr.bf16.mxu1 %v4393_v1  ;;  %3342 = vmatprep.subr.bf16.mxu0 %v4395_v2 }
 0x411   :  { %v1232_v39 = vpop.f32.mrb[2].mxu1  ;;  %v1303_v47 = vpop.f32.mrb[10].mxu0 }
 0x412   :  { %v3703_v51 = vadd.f32 %v1232_v39, %v4536_v27  ;;  %v1234_v52 = vpop.f32.mrb[3].mxu1  ;;  %v1305_v53 = vpop.f32.mrb[11].mxu0  ;;  %v3719_v59 = vadd.f32 %v1303_v47, %v4542_v54 }
 0x413   :  { %v3704_v42 = vadd.f32 %v1234_v52, %v4538_v30  ;;  %v3720_v63 = vadd.f32 %v1305_v53, %v4544_v55 }
 0x414   :  { %v2710_v43 = vmul.f32 -1.442695, %v3703_v51  ;;  %v2712_v0 = vmul.f32 -1.442695, %v3719_v59 }
 0x415   :  { %v2711_v58 = vmul.f32 -1.442695, %v3704_v42 }
 0x416   :  { %3813 = vpow2.f32 %v2710_v43 }
 0x417   :  { %3815 = vpow2.f32 %v2711_v58 }
 0x418   :  { %3817 = vtanh.f32 %v3720_v63 }
 0x419   :  { %3819 = vpow2.f32 %v2712_v0 }
 0x420   :  { %v3814_v3 = vpop.eup %3813 }
 0x421   :  { %v1321_v4 = vadd.f32 1.0, %v3814_v3  ;;  %v3816_v5 = vpop.eup %3815 }
 0x422   :  { %v1322_v46 = vadd.f32 1.0, %v3816_v5  ;;  %v3818_v20 = vpop.eup %3817 }
 0x423   :  { %3821 = vrcp.f32 %v1321_v4  ;;  %v3820_v13 = vpop.eup %3819 }
 0x424   :  { %3823 = vrcp.f32 %v1322_v46  ;;  %v1323_v19 = vadd.f32 1.0, %v3820_v13 }
 0x426   :  { %3825 = vrcp.f32 %v1323_v19 }
 0x42d   :  { %v3822_v50 = vpop.eup %3821 }
 0x42e   :  { %v1332_v14 = vmul.f32 %v3822_v50, %v3818_v20  ;;  %v3824_v17 = vpop.eup %3823 }
 0x42f   :  { %v1331_v23 = vmul.f32 %v3824_v17, %v4550_v24 }
 0x430   :  { %v3826_v35 = vpop.eup %3825 }
 0x431   :  { %v4592_v9 = vadd.f32 %v1332_v14, %v1331_v23 }
 0x433   :  { %3827 = vtanh.f32 %v4592_v9 }
 0x43d   :  { %v3828_v38 = vpop.eup %3827 }
 0x43e   :  { %v1335_v39 = vmul.f32 %v3828_v38, %v3826_v35 }
 0x440   :  { %1408 = vmatmul.mubr.f32.vlgmr.msra.gmra.mrb[4].mxu1 %v1335_v39  ;;  %1479 = vmatmul.mubr.f32.vlgmr.msra.gmra.mrb[12].mxu0 %v1335_v39 }
 0x441   :  { %3312 = vmatpush1.bf16.msra.mxu1 %v4399_v6  ;;  %3344 = vmatpush1.bf16.msra.mxu0 %v4401_v7 }
 0x442   :  { %3314 = vmatprep.subr.bf16.mxu1 %v4405_v11  ;;  %3346 = vmatprep.subr.bf16.mxu0 %v4407_v12 }
 0x443   :  { %1584 = vmatprep.mubr.f32.mxu1 %v4148_v18  ;;  %1655 = vmatprep.mubr.f32.mxu0 %v4148_v18 }
 0x445   :  { %3316 = vmatpush1.bf16.msra.mxu1 %v4415_v21  ;;  %3348 = vmatpush1.bf16.msra.mxu0 %v4417_v22 }
 0x446   :  { %3318 = vmatprep.subr.bf16.mxu1 %v4421_v25  ;;  %3350 = vmatprep.subr.bf16.mxu0 %v4423_v26 }
 0x449   :  { %3320 = vmatpush1.bf16.msra.mxu1 %v4429_v32  ;;  %3352 = vmatpush1.bf16.msra.mxu0 %v4431_v33 }
 0x44a   :  { %3322 = vmatprep.subr.bf16.mxu1 %v4435_v36  ;;  %3354 = vmatprep.subr.bf16.mxu0 %v4437_v37 }
 0x44d   :  { %3324 = vmatpush1.bf16.msra.mxu1 %v4441_v44  ;;  %3356 = vmatpush1.bf16.msra.mxu0 %v4443_v45 }
 0x44e   :  { %3326 = vmatprep.subr.bf16.mxu1 %v4447_v48  ;;  %3358 = vmatprep.subr.bf16.mxu0 %v4449_v49 }
 0x451   :  { %3328 = vmatpush1.bf16.msra.mxu1 %v4453_v56  ;;  %3360 = vmatpush1.bf16.msra.mxu0 %v4455_v57 }
 0x452   :  { %3330 = vmatprep.subr.bf16.mxu1 %v4459_v60  ;;  %3362 = vmatprep.subr.bf16.mxu0 %v4461_v61 }
 0x455   :  { %3332 = vmatpush1.bf16.msra.mxu1 %v4465_v8  ;;  %3364 = vmatpush1.bf16.msra.mxu0 %v4467_v10 }
 0x456   :  { %3334 = vmatprep.subr.bf16.mxu1 %v4471_v15  ;;  %3366 = vmatprep.subr.bf16.mxu0 %v4473_v16 }
 0x459   :  { %3336 = vmatpush1.bf16.msra.mxu1 %v4477_v28  ;;  %3368 = vmatpush1.bf16.msra.mxu0 %v4479_v29 }
 0x45a   :  { %3338 = vmatprep.subr.bf16.mxu1 %v4483_v31  ;;  %3370 = vmatprep.subr.bf16.mxu0 %v4485_v34 }
 0x45d   :  { %3340 = vmatpush1.bf16.msra.mxu1 %v4489_v40  ;;  %3372 = vmatpush1.bf16.msra.mxu0 %v4491_v41 }
 0x45e   :  { %3374 = vmatprep.subr.bf16.mxu1 %v4393_v1  ;;  %3406 = vmatprep.subr.bf16.mxu0 %v4395_v2 }
 0x513   :  { %v1409_v24 = vpop.f32.mrb[4].mxu1  ;;  %v1480_v47 = vpop.f32.mrb[12].mxu0 }
 0x514   :  { %v3705_v51 = vadd.f32 %v1409_v24, %v4536_v27  ;;  %v1411_v52 = vpop.f32.mrb[5].mxu1  ;;  %v1482_v53 = vpop.f32.mrb[13].mxu0  ;;  %v3721_v59 = vadd.f32 %v1480_v47, %v4542_v54 }
 0x515   :  { %v3706_v42 = vadd.f32 %v1411_v52, %v4538_v30  ;;  %v3722_v63 = vadd.f32 %v1482_v53, %v4544_v55 }
 0x516   :  { %v2713_v43 = vmul.f32 -1.442695, %v3705_v51  ;;  %v2715_v0 = vmul.f32 -1.442695, %v3721_v59 }
 0x517   :  { %v2714_v58 = vmul.f32 -1.442695, %v3706_v42 }
 0x518   :  { %3829 = vpow2.f32 %v2713_v43 }
 0x519   :  { %3831 = vpow2.f32 %v2714_v58 }
 0x51a   :  { %3833 = vtanh.f32 %v3722_v63 }
 0x51b   :  { %3835 = vpow2.f32 %v2715_v0 }
 0x522   :  { %v3830_v3 = vpop.eup %3829 }
 0x523   :  { %v1498_v4 = vadd.f32 1.0, %v3830_v3  ;;  %v3832_v5 = vpop.eup %3831 }
 0x524   :  { %v1499_v46 = vadd.f32 1.0, %v3832_v5  ;;  %v3834_v20 = vpop.eup %3833 }
 0x525   :  { %3837 = vrcp.f32 %v1498_v4  ;;  %v3836_v13 = vpop.eup %3835 }
 0x526   :  { %3839 = vrcp.f32 %v1499_v46  ;;  %v1500_v19 = vadd.f32 1.0, %v3836_v13 }
 0x528   :  { %3841 = vrcp.f32 %v1500_v19 }
 0x52f   :  { %v3838_v50 = vpop.eup %3837 }
 0x530   :  { %v1509_v14 = vmul.f32 %v3838_v50, %v3834_v20  ;;  %v3840_v17 = vpop.eup %3839 }
 0x531   :  { %v1508_v23 = vmul.f32 %v3840_v17, %v4592_v9 }
 0x532   :  { %v3842_v38 = vpop.eup %3841 }
 0x533   :  { %v4634_v35 = vadd.f32 %v1509_v14, %v1508_v23 }
 0x535   :  { %3843 = vtanh.f32 %v4634_v35 }
 0x53f   :  { %v3844_v39 = vpop.eup %3843 }
 0x540   :  { %v1512_v24 = vmul.f32 %v3844_v39, %v3842_v38 }
 0x542   :  { %1585 = vmatmul.mubr.f32.vlgmr.msra.gmra.mrb[6].mxu1 %v1512_v24  ;;  %1656 = vmatmul.mubr.f32.vlgmr.msra.gmra.mrb[14].mxu0 %v1512_v24 }
 0x543   :  { %3376 = vmatpush1.bf16.msra.mxu1 %v4399_v6  ;;  %3408 = vmatpush1.bf16.msra.mxu0 %v4401_v7 }
 0x544   :  { %3378 = vmatprep.subr.bf16.mxu1 %v4405_v11  ;;  %3410 = vmatprep.subr.bf16.mxu0 %v4407_v12 }
 0x545   :  { %1761 = vmatprep.mubr.f32.mxu1 %v4148_v18  ;;  %1832 = vmatprep.mubr.f32.mxu0 %v4148_v18 }
 0x547   :  { %3380 = vmatpush1.bf16.msra.mxu1 %v4415_v21  ;;  %3412 = vmatpush1.bf16.msra.mxu0 %v4417_v22 }
 0x548   :  { %3382 = vmatprep.subr.bf16.mxu1 %v4421_v25  ;;  %3414 = vmatprep.subr.bf16.mxu0 %v4423_v26 }
 0x54b   :  { %3384 = vmatpush1.bf16.msra.mxu1 %v4429_v32  ;;  %3416 = vmatpush1.bf16.msra.mxu0 %v4431_v33 }
 0x54c   :  { %3386 = vmatprep.subr.bf16.mxu1 %v4435_v36  ;;  %3418 = vmatprep.subr.bf16.mxu0 %v4437_v37 }
 0x54f   :  { %3388 = vmatpush1.bf16.msra.mxu1 %v4441_v44  ;;  %3420 = vmatpush1.bf16.msra.mxu0 %v4443_v45 }
 0x550   :  { %3390 = vmatprep.subr.bf16.mxu1 %v4447_v48  ;;  %3422 = vmatprep.subr.bf16.mxu0 %v4449_v49 }
 0x553   :  { %3392 = vmatpush1.bf16.msra.mxu1 %v4453_v56  ;;  %3424 = vmatpush1.bf16.msra.mxu0 %v4455_v57 }
 0x554   :  { %3394 = vmatprep.subr.bf16.mxu1 %v4459_v60  ;;  %3426 = vmatprep.subr.bf16.mxu0 %v4461_v61 }
 0x557   :  { %3396 = vmatpush1.bf16.msra.mxu1 %v4465_v8  ;;  %3428 = vmatpush1.bf16.msra.mxu0 %v4467_v10 }
 0x558   :  { %3398 = vmatprep.subr.bf16.mxu1 %v4471_v15  ;;  %3430 = vmatprep.subr.bf16.mxu0 %v4473_v16 }
 0x55b   :  { %3400 = vmatpush1.bf16.msra.mxu1 %v4477_v28  ;;  %3432 = vmatpush1.bf16.msra.mxu0 %v4479_v29 }
 0x55c   :  { %3402 = vmatprep.subr.bf16.mxu1 %v4483_v31  ;;  %3434 = vmatprep.subr.bf16.mxu0 %v4485_v34 }
 0x55f   :  { %3404 = vmatpush1.bf16.msra.mxu1 %v4489_v40  ;;  %3436 = vmatpush1.bf16.msra.mxu0 %v4491_v41 }
 0x560   :  { %3438 = vmatprep.subr.bf16.mxu1 %v4393_v1  ;;  %3470 = vmatprep.subr.bf16.mxu0 %v4395_v2 }
 0x615   :  { %v1586_v9 = vpop.f32.mrb[6].mxu1  ;;  %v1657_v47 = vpop.f32.mrb[14].mxu0 }
 0x616   :  { %v3707_v51 = vadd.f32 %v1586_v9, %v4536_v27  ;;  %v1588_v52 = vpop.f32.mrb[7].mxu1  ;;  %v1659_v53 = vpop.f32.mrb[15].mxu0  ;;  %v3723_v59 = vadd.f32 %v1657_v47, %v4542_v54 }
 0x617   :  { %v3708_v42 = vadd.f32 %v1588_v52, %v4538_v30  ;;  %v3724_v63 = vadd.f32 %v1659_v53, %v4544_v55 }
 0x618   :  { %v2716_v43 = vmul.f32 -1.442695, %v3707_v51  ;;  %v2718_v0 = vmul.f32 -1.442695, %v3723_v59 }
 0x619   :  { %v2717_v58 = vmul.f32 -1.442695, %v3708_v42 }
 0x61a   :  { %3845 = vpow2.f32 %v2716_v43 }
 0x61b   :  { %3847 = vpow2.f32 %v2717_v58 }
 0x61c   :  { %3849 = vtanh.f32 %v3724_v63 }
 0x61d   :  { %3851 = vpow2.f32 %v2718_v0 }
 0x624   :  { %v3846_v3 = vpop.eup %3845 }
 0x625   :  { %v1675_v4 = vadd.f32 1.0, %v3846_v3  ;;  %v3848_v5 = vpop.eup %3847 }
 0x626   :  { %v1676_v46 = vadd.f32 1.0, %v3848_v5  ;;  %v3850_v20 = vpop.eup %3849 }
 0x627   :  { %3853 = vrcp.f32 %v1675_v4  ;;  %v3852_v13 = vpop.eup %3851 }
 0x628   :  { %3855 = vrcp.f32 %v1676_v46  ;;  %v1677_v19 = vadd.f32 1.0, %v3852_v13 }
 0x62a   :  { %3857 = vrcp.f32 %v1677_v19 }
 0x631   :  { %v3854_v50 = vpop.eup %3853 }
 0x632   :  { %v1686_v14 = vmul.f32 %v3854_v50, %v3850_v20  ;;  %v3856_v17 = vpop.eup %3855 }
 0x633   :  { %v1685_v23 = vmul.f32 %v3856_v17, %v4634_v35 }
 0x634   :  { %v3858_v39 = vpop.eup %3857 }
 0x635   :  { %v4676_v38 = vadd.f32 %v1686_v14, %v1685_v23 }
 0x637   :  { %3859 = vtanh.f32 %v4676_v38 }
 0x641   :  { %v3860_v24 = vpop.eup %3859 }
 0x642   :  { %v1689_v9 = vmul.f32 %v3860_v24, %v3858_v39 }
 0x644   :  { %1762 = vmatmul.mubr.f32.vlgmr.msra.gmra.mrb[8].mxu1 %v1689_v9  ;;  %1833 = vmatmul.mubr.f32.vlgmr.msra.gmra.mrb[16].mxu0 %v1689_v9 }
 0x645   :  { %3440 = vmatpush1.bf16.msra.mxu1 %v4399_v6  ;;  %3472 = vmatpush1.bf16.msra.mxu0 %v4401_v7 }
 0x646   :  { %3442 = vmatprep.subr.bf16.mxu1 %v4405_v11  ;;  %3474 = vmatprep.subr.bf16.mxu0 %v4407_v12 }
 0x647   :  { %1938 = vmatprep.mubr.f32.mxu1 %v4148_v18  ;;  %2009 = vmatprep.mubr.f32.mxu0 %v4148_v18 }
 0x649   :  { %3444 = vmatpush1.bf16.msra.mxu1 %v4415_v21  ;;  %3476 = vmatpush1.bf16.msra.mxu0 %v4417_v22 }
 0x64a   :  { %3446 = vmatprep.subr.bf16.mxu1 %v4421_v25  ;;  %3478 = vmatprep.subr.bf16.mxu0 %v4423_v26 }
 0x64d   :  { %3448 = vmatpush1.bf16.msra.mxu1 %v4429_v32  ;;  %3480 = vmatpush1.bf16.msra.mxu0 %v4431_v33 }
 0x64e   :  { %3450 = vmatprep.subr.bf16.mxu1 %v4435_v36  ;;  %3482 = vmatprep.subr.bf16.mxu0 %v4437_v37 }
 0x651   :  { %3452 = vmatpush1.bf16.msra.mxu1 %v4441_v44  ;;  %3484 = vmatpush1.bf16.msra.mxu0 %v4443_v45 }
 0x652   :  { %3454 = vmatprep.subr.bf16.mxu1 %v4447_v48  ;;  %3486 = vmatprep.subr.bf16.mxu0 %v4449_v49 }
 0x655   :  { %3456 = vmatpush1.bf16.msra.mxu1 %v4453_v56  ;;  %3488 = vmatpush1.bf16.msra.mxu0 %v4455_v57 }
 0x656   :  { %3458 = vmatprep.subr.bf16.mxu1 %v4459_v60  ;;  %3490 = vmatprep.subr.bf16.mxu0 %v4461_v61 }
 0x659   :  { %3460 = vmatpush1.bf16.msra.mxu1 %v4465_v8  ;;  %3492 = vmatpush1.bf16.msra.mxu0 %v4467_v10 }
 0x65a   :  { %3462 = vmatprep.subr.bf16.mxu1 %v4471_v15  ;;  %3494 = vmatprep.subr.bf16.mxu0 %v4473_v16 }
 0x65d   :  { %3464 = vmatpush1.bf16.msra.mxu1 %v4477_v28  ;;  %3496 = vmatpush1.bf16.msra.mxu0 %v4479_v29 }
 0x65e   :  { %3466 = vmatprep.subr.bf16.mxu1 %v4483_v31  ;;  %3498 = vmatprep.subr.bf16.mxu0 %v4485_v34 }
 0x661   :  { %3468 = vmatpush1.bf16.msra.mxu1 %v4489_v40  ;;  %3500 = vmatpush1.bf16.msra.mxu0 %v4491_v41 }
 0x662   :  { %3502 = vmatprep.subr.bf16.mxu1 %v4393_v1  ;;  %3534 = vmatprep.subr.bf16.mxu0 %v4395_v2 }
 0x717   :  { %v1763_v35 = vpop.f32.mrb[8].mxu1  ;;  %v1834_v47 = vpop.f32.mrb[16].mxu0 }
 0x718   :  { %v3709_v51 = vadd.f32 %v1763_v35, %v4536_v27  ;;  %v1765_v52 = vpop.f32.mrb[9].mxu1  ;;  %v1836_v53 = vpop.f32.mrb[17].mxu0  ;;  %v3725_v59 = vadd.f32 %v1834_v47, %v4542_v54 }
 0x719   :  { %v3710_v42 = vadd.f32 %v1765_v52, %v4538_v30  ;;  %v3726_v63 = vadd.f32 %v1836_v53, %v4544_v55 }
 0x71a   :  { %v2719_v43 = vmul.f32 -1.442695, %v3709_v51  ;;  %v2721_v0 = vmul.f32 -1.442695, %v3725_v59 }
 0x71b   :  { %v2720_v58 = vmul.f32 -1.442695, %v3710_v42 }
 0x71c   :  { %3861 = vpow2.f32 %v2719_v43 }
 0x71d   :  { %3863 = vpow2.f32 %v2720_v58 }
 0x71e   :  { %3865 = vtanh.f32 %v3726_v63 }
 0x71f   :  { %3867 = vpow2.f32 %v2721_v0 }
 0x726   :  { %v3862_v3 = vpop.eup %3861 }
 0x727   :  { %v1852_v4 = vadd.f32 1.0, %v3862_v3  ;;  %v3864_v5 = vpop.eup %3863 }
 0x728   :  { %v1853_v46 = vadd.f32 1.0, %v3864_v5  ;;  %v3866_v20 = vpop.eup %3865 }
 0x729   :  { %3869 = vrcp.f32 %v1852_v4  ;;  %v3868_v13 = vpop.eup %3867 }
 0x72a   :  { %3871 = vrcp.f32 %v1853_v46  ;;  %v1854_v19 = vadd.f32 1.0, %v3868_v13 }
 0x72c   :  { %3873 = vrcp.f32 %v1854_v19 }
 0x733   :  { %v3870_v50 = vpop.eup %3869 }
 0x734   :  { %v1863_v14 = vmul.f32 %v3870_v50, %v3866_v20  ;;  %v3872_v17 = vpop.eup %3871 }
 0x735   :  { %v1862_v23 = vmul.f32 %v3872_v17, %v4676_v38 }
 0x736   :  { %v3874_v24 = vpop.eup %3873 }
 0x737   :  { %v4718_v39 = vadd.f32 %v1863_v14, %v1862_v23 }
 0x739   :  { %3875 = vtanh.f32 %v4718_v39 }
 0x743   :  { %v3876_v9 = vpop.eup %3875 }
 0x744   :  { %v1866_v35 = vmul.f32 %v3876_v9, %v3874_v24 }
 0x746   :  { %1939 = vmatmul.mubr.f32.vlgmr.msra.gmra.mrb[10].mxu1 %v1866_v35  ;;  %2010 = vmatmul.mubr.f32.vlgmr.msra.gmra.mrb[18].mxu0 %v1866_v35  ;;  %v2417_v35 = vld [vmem:[#allocation14 + $0x18] sm:$0xff] }
 0x747   :  { %3504 = vmatpush1.bf16.msra.mxu1 %v4399_v6  ;;  %3536 = vmatpush1.bf16.msra.mxu0 %v4401_v7 }
 0x748   :  { %3506 = vmatprep.subr.bf16.mxu1 %v4405_v11  ;;  %3538 = vmatprep.subr.bf16.mxu0 %v4407_v12 }
 0x749   :  { %2115 = vmatprep.mubr.f32.mxu1 %v4148_v18  ;;  %2186 = vmatprep.mubr.f32.mxu0 %v4148_v18 }
 0x74b   :  { %3508 = vmatpush1.bf16.msra.mxu1 %v4415_v21  ;;  %3540 = vmatpush1.bf16.msra.mxu0 %v4417_v22 }
 0x74c   :  { %3510 = vmatprep.subr.bf16.mxu1 %v4421_v25  ;;  %3542 = vmatprep.subr.bf16.mxu0 %v4423_v26 }
 0x74f   :  { %3512 = vmatpush1.bf16.msra.mxu1 %v4429_v32  ;;  %3544 = vmatpush1.bf16.msra.mxu0 %v4431_v33 }
 0x750   :  { %3514 = vmatprep.subr.bf16.mxu1 %v4435_v36  ;;  %3546 = vmatprep.subr.bf16.mxu0 %v4437_v37 }
 0x753   :  { %3516 = vmatpush1.bf16.msra.mxu1 %v4441_v44  ;;  %3548 = vmatpush1.bf16.msra.mxu0 %v4443_v45 }
 0x754   :  { %3518 = vmatprep.subr.bf16.mxu1 %v4447_v48  ;;  %3550 = vmatprep.subr.bf16.mxu0 %v4449_v49 }
 0x757   :  { %3520 = vmatpush1.bf16.msra.mxu1 %v4453_v56  ;;  %3552 = vmatpush1.bf16.msra.mxu0 %v4455_v57 }
 0x758   :  { %3522 = vmatprep.subr.bf16.mxu1 %v4459_v60  ;;  %3554 = vmatprep.subr.bf16.mxu0 %v4461_v61 }
 0x75b   :  { %3524 = vmatpush1.bf16.msra.mxu1 %v4465_v8  ;;  %3556 = vmatpush1.bf16.msra.mxu0 %v4467_v10 }
 0x75c   :  { %3526 = vmatprep.subr.bf16.mxu1 %v4471_v15  ;;  %3558 = vmatprep.subr.bf16.mxu0 %v4473_v16 }
 0x75f   :  { %3528 = vmatpush1.bf16.msra.mxu1 %v4477_v28  ;;  %3560 = vmatpush1.bf16.msra.mxu0 %v4479_v29 }
 0x760   :  { %3530 = vmatprep.subr.bf16.mxu1 %v4483_v31  ;;  %3562 = vmatprep.subr.bf16.mxu0 %v4485_v34 }
 0x763   :  { %3532 = vmatpush1.bf16.msra.mxu1 %v4489_v40  ;;  %3564 = vmatpush1.bf16.msra.mxu0 %v4491_v41 }
 0x764   :  { %3566 = vmatprep.subr.bf16.mxu1 %v4393_v1  ;;  %3598 = vmatprep.subr.bf16.mxu0 %v4395_v2 }
 0x819   :  { %v1940_v38 = vpop.f32.mrb[10].mxu1  ;;  %v2011_v47 = vpop.f32.mrb[18].mxu0 }
 0x81a   :  { %v3711_v51 = vadd.f32 %v1940_v38, %v4536_v27  ;;  %v1942_v52 = vpop.f32.mrb[11].mxu1  ;;  %v2013_v53 = vpop.f32.mrb[19].mxu0  ;;  %v3727_v59 = vadd.f32 %v2011_v47, %v4542_v54  ;;  %v2418_v47 = vld [vmem:[#allocation14 + $0x20] sm:$0xff] }
 0x81b   :  { %v3712_v42 = vadd.f32 %v1942_v52, %v4538_v30  ;;  %v3728_v63 = vadd.f32 %v2013_v53, %v4544_v55  ;;  %v2420_v53 = vld [vmem:[#allocation14 + $0x30] sm:$0xff] }
 0x81c   :  { %v2722_v43 = vmul.f32 -1.442695, %v3711_v51  ;;  %v2724_v0 = vmul.f32 -1.442695, %v3727_v59  ;;  %v2419_v51 = vld [vmem:[#allocation14 + $0x28] sm:$0xff] }
 0x81d   :  { %v2723_v58 = vmul.f32 -1.442695, %v3712_v42  ;;  %v3636_v52 = vpack.c.bf16 %v2419_v51, %v2418_v47  ;;  %v2421_v42 = vld [vmem:[#allocation14 + $0x38] sm:$0xff]  ;;  %v2423_v59 = vld [vmem:[#allocation14 + $0x48] sm:$0xff]  ;;  %v2590_v47 = vld [vmem:[%s4903_s10 + $0x58] sm:$0xff] }
 0x81e   :  { %3877 = vpow2.f32 %v2722_v43  ;;  %v3639_v43 = vpack.c.bf16 %v2421_v42, %v2420_v53 }
 0x81f   :  { %3879 = vpow2.f32 %v2723_v58  ;;  %v2422_v58 = vld [vmem:[#allocation14 + $0x40] sm:$0xff] }
 0x820   :  { %3881 = vtanh.f32 %v3728_v63  ;;  %v3642_v63 = vpack.c.bf16 %v2423_v59, %v2422_v58 }
 0x821   :  { %3883 = vpow2.f32 %v2724_v0  ;;  %v2424_v0 = vld [vmem:[#allocation14 + $0x50] sm:$0xff] }
 0x828   :  { %v3878_v1 = vpop.eup %3877 }
 0x829   :  { %v2029_v3 = vadd.f32 1.0, %v3878_v1  ;;  %v3880_v2 = vpop.eup %3879  ;;  %v2425_v1 = vld [vmem:[#allocation14 + $0x58] sm:$0xff] }
 0x82a   :  { %v2030_v4 = vadd.f32 1.0, %v3880_v2  ;;  %v3882_v5 = vpop.eup %3881  ;;  %v2426_v2 = vld [vmem:[#allocation14 + $0x60] sm:$0xff] }
 0x82b   :  { %3885 = vrcp.f32 %v2029_v3  ;;  %v3884_v46 = vpop.eup %3883  ;;  %v3645_v3 = vpack.c.bf16 %v2425_v1, %v2424_v0 }
 0x82c   :  { %3887 = vrcp.f32 %v2030_v4  ;;  %v2031_v14 = vadd.f32 1.0, %v3884_v46  ;;  %v2427_v4 = vld [vmem:[#allocation14 + $0x68] sm:$0xff]  ;;  %v2428_v46 = vld [vmem:[#allocation14 + $0x70] sm:$0xff] }
 0x82e   :  { %3889 = vrcp.f32 %v2031_v14  ;;  %v2399_v14 = vld [vmem:[#allocation13 + $0x8] sm:$0xff] }
 0x835   :  { %v3886_v20 = vpop.eup %3885 }
 0x836   :  { %v2040_v13 = vmul.f32 %v3886_v20, %v3882_v5  ;;  %v3888_v50 = vpop.eup %3887  ;;  %v3648_v5 = vpack.c.bf16 %v2427_v4, %v2426_v2  ;;  %v2429_v20 = vld [vmem:[#allocation14 + $0x78] sm:$0xff] }
 0x837   :  { %v2039_v17 = vmul.f32 %v3888_v50, %v4718_v39  ;;  %v2416_v39 = vld [vmem:[#allocation14 + $0x10] sm:$0xff]  ;;  %v2398_v50 = vld [vmem:[#allocation13] sm:$0xff] }
 0x838   :  { %v3890_v23 = vpop.eup %3889  ;;  %v3633_v38 = vpack.c.bf16 %v2417_v35, %v2416_v39  ;;  %v2588_v39 = vld [vmem:[%s4903_s10 + $0x48] sm:$0xff] }
 0x839   :  { %v4760_v19 = vadd.f32 %v2040_v13, %v2039_v17  ;;  %v3651_v13 = vpack.c.bf16 %v2429_v20, %v2428_v46  ;;  %v3654_v17 = vpack.c.bf16 %v2399_v14, %v2398_v50 }
 0x83b   :  { %3891 = vtanh.f32 %v4760_v19 }
 0x845   :  { %v3892_v24 = vpop.eup %3891 }
 0x846   :  { %v2043_v9 = vmul.f32 %v3892_v24, %v3890_v23  ;;  %v2401_v23 = vld [vmem:[#allocation13 + $0x18] sm:$0xff] }
 0x848   :  { %2116 = vmatmul.mubr.f32.vlgmr.msra.gmra.mrb[12].mxu1 %v2043_v9  ;;  %2187 = vmatmul.mubr.f32.vlgmr.msra.gmra.mrb[20].mxu0 %v2043_v9  ;;  %v2402_v9 = vld [vmem:[#allocation13 + $0x20] sm:$0xff] }
 0x849   :  { %3568 = vmatpush1.bf16.msra.mxu1 %v4399_v6  ;;  %3600 = vmatpush1.bf16.msra.mxu0 %v4401_v7  ;;  %v4149_v6 = vmov 0.0|0.0  }
 0x84a   :  { %3570 = vmatprep.subr.bf16.mxu1 %v4405_v11  ;;  %3602 = vmatprep.subr.bf16.mxu0 %v4407_v12 }
 0x84b   :  { %2292 = vmatprep.mubr.f32.mxu1 %v4148_v18  ;;  %2363 = vmatprep.mubr.f32.mxu0 %v4148_v18 }
 0x84d   :  { %3572 = vmatpush1.bf16.msra.mxu1 %v4415_v21  ;;  %3604 = vmatpush1.bf16.msra.mxu0 %v4417_v22 }
 0x84e   :  { %3574 = vmatprep.subr.bf16.mxu1 %v4421_v25  ;;  %3606 = vmatprep.subr.bf16.mxu0 %v4423_v26 }
 0x851   :  { %3576 = vmatpush1.bf16.msra.mxu1 %v4429_v32  ;;  %3608 = vmatpush1.bf16.msra.mxu0 %v4431_v33 }
 0x852   :  { %3578 = vmatprep.subr.bf16.mxu1 %v4435_v36  ;;  %3610 = vmatprep.subr.bf16.mxu0 %v4437_v37 }
 0x855   :  { %3580 = vmatpush1.bf16.msra.mxu1 %v4441_v44  ;;  %3612 = vmatpush1.bf16.msra.mxu0 %v4443_v45 }
 0x856   :  { %3582 = vmatprep.subr.bf16.mxu1 %v4447_v48  ;;  %3614 = vmatprep.subr.bf16.mxu0 %v4449_v49 }
 0x859   :  { %3584 = vmatpush1.bf16.msra.mxu1 %v4453_v56  ;;  %3616 = vmatpush1.bf16.msra.mxu0 %v4455_v57 }
 0x85a   :  { %3586 = vmatprep.subr.bf16.mxu1 %v4459_v60  ;;  %3618 = vmatprep.subr.bf16.mxu0 %v4461_v61 }
 0x85d   :  { %3588 = vmatpush1.bf16.msra.mxu1 %v4465_v8  ;;  %3620 = vmatpush1.bf16.msra.mxu0 %v4467_v10 }
 0x85e   :  { %3590 = vmatprep.subr.bf16.mxu1 %v4471_v15  ;;  %3622 = vmatprep.subr.bf16.mxu0 %v4473_v16 }
 0x861   :  { %3592 = vmatpush1.bf16.msra.mxu1 %v4477_v28  ;;  %3624 = vmatpush1.bf16.msra.mxu0 %v4479_v29  ;;  %v2414_v28 = vld [vmem:[#allocation14] sm:$0xff]  ;;  %v2415_v29 = vld [vmem:[#allocation14 + $0x8] sm:$0xff] }
 0x862   :  { %3594 = vmatprep.subr.bf16.mxu1 %v4483_v31  ;;  %3626 = vmatprep.subr.bf16.mxu0 %v4485_v34 }
 0x865   :  { %3596 = vmatpush1.bf16.msra.mxu1 %v4489_v40  ;;  %3628 = vmatpush1.bf16.msra.mxu0 %v4491_v41  ;;  %v3630_v40 = vpack.c.bf16 %v2415_v29, %v2414_v28  ;;  %v2584_v28 = vld [vmem:[%s4903_s10 + $0x28] sm:$0xff] }
 0x866   :  { %3629 = vmatprep.subr.bf16.mxu1 %v4149_v6  ;;  %3653 = vmatprep.subr.bf16.mxu0 %v4149_v6 }
 0x91b   :  { %v2117_v7 = vpop.f32.mrb[12].mxu1  ;;  %v2188_v11 = vpop.f32.mrb[20].mxu0 }
 0x91c   :  { %v3713_v12 = vadd.f32 %v2117_v7, %v4536_v27  ;;  %v2119_v21 = vpop.f32.mrb[13].mxu1  ;;  %v2190_v22 = vpop.f32.mrb[21].mxu0  ;;  %v3729_v33 = vadd.f32 %v2188_v11, %v4542_v54  ;;  %v2403_v7 = vld [vmem:[#allocation13 + $0x28] sm:$0xff] }
 0x91d   :  { %v3714_v25 = vadd.f32 %v2119_v21, %v4538_v30  ;;  %v3730_v36 = vadd.f32 %v2190_v22, %v4544_v55  ;;  %v3660_v11 = vpack.c.bf16 %v2403_v7, %v2402_v9  ;;  %v2406_v21 = vld [vmem:[#allocation13 + $0x40] sm:$0xff]  ;;  %v2407_v22 = vld [vmem:[#allocation13 + $0x48] sm:$0xff] }
 0x91e   :  { %v2725_v26 = vmul.f32 -1.442695, %v3713_v12  ;;  %v2727_v37 = vmul.f32 -1.442695, %v3729_v33 }
 0x91f   :  { %v2726_v32 = vmul.f32 -1.442695, %v3714_v25  ;;  %v3666_v25 = vpack.c.bf16 %v2407_v22, %v2406_v21 }
 0x920   :  { %3893 = vpow2.f32 %v2725_v26  ;;  %v2408_v26 = vld [vmem:[#allocation13 + $0x50] sm:$0xff] }
 0x921   :  { %3895 = vpow2.f32 %v2726_v32  ;;  %v2409_v32 = vld [vmem:[#allocation13 + $0x58] sm:$0xff] }
 0x922   :  { %3897 = vtanh.f32 %v3730_v36  ;;  %v3669_v33 = vpack.c.bf16 %v2409_v32, %v2408_v26  ;;  %v2410_v36 = vld [vmem:[#allocation13 + $0x60] sm:$0xff] }
 0x923   :  { %3899 = vpow2.f32 %v2727_v37  ;;  %v2411_v37 = vld [vmem:[#allocation13 + $0x68] sm:$0xff] }
 0x92a   :  { %v3894_v44 = vpop.eup %3893 }
 0x92b   :  { %v2206_v45 = vadd.f32 1.0, %v3894_v44  ;;  %v3896_v48 = vpop.eup %3895  ;;  %v3672_v44 = vpack.c.bf16 %v2411_v37, %v2410_v36 }
 0x92c   :  { %v2207_v49 = vadd.f32 1.0, %v3896_v48  ;;  %v3898_v56 = vpop.eup %3897  ;;  %v2413_v48 = vld [vmem:[#allocation13 + $0x78] sm:$0xff] }
 0x92d   :  { %3901 = vrcp.f32 %v2206_v45  ;;  %v3900_v57 = vpop.eup %3899  ;;  %v2412_v45 = vld [vmem:[#allocation13 + $0x70] sm:$0xff] }
 0x92e   :  { %3903 = vrcp.f32 %v2207_v49  ;;  %v2208_v10 = vadd.f32 1.0, %v3900_v57  ;;  %v3675_v49 = vpack.c.bf16 %v2413_v48, %v2412_v45  ;;  %v2580_v57 = vld [vmem:[%s4903_s10 + $0x8] sm:$0xff] }
 0x930   :  { %3905 = vrcp.f32 %v2208_v10 }
 0x937   :  { %v3902_v60 = vpop.eup %3901 }
 0x938   :  { %v2217_v61 = vmul.f32 %v3902_v60, %v3898_v56  ;;  %v3904_v8 = vpop.eup %3903  ;;  %v2579_v56 = vld [vmem:[%s4903_s10] sm:$0xff]  ;;  %v2581_v60 = vld [vmem:[%s4903_s10 + $0x10] sm:$0xff] }
 0x939   :  { %v2216_v15 = vmul.f32 %v3904_v8, %v4760_v19  ;;  %v2400_v19 = vld [vmem:[#allocation13 + $0x10] sm:$0xff] }
 0x93a   :  { %v3906_v31 = vpop.eup %3905  ;;  %v3657_v24 = vpack.c.bf16 %v2401_v23, %v2400_v19  ;;  %v2582_v8 = vld [vmem:[%s4903_s10 + $0x18] sm:$0xff] }
 0x93b   :  { %v4802_v16 = vadd.f32 %v2217_v61, %v2216_v15  ;;  %v3678_v61 = vpack.c.bf16 %v2580_v57, %v2579_v56  ;;  %v3681_v10 = vpack.c.bf16 %v2582_v8, %v2581_v60  ;;  %v2583_v15 = vld [vmem:[%s4903_s10 + $0x20] sm:$0xff] }
 0x93c   :  { %v3684_v29 = vpack.c.bf16 %v2584_v28, %v2583_v15 }
 0x93d   :  { %3907 = vtanh.f32 %v4802_v16 }
 0x947   :  { %v3908_v34 = vpop.eup %3907 }
 0x948   :  { %v2220_v41 = vmul.f32 %v3908_v34, %v3906_v31  ;;  %v2585_v31 = vld [vmem:[%s4903_s10 + $0x30] sm:$0xff]  ;;  %v2586_v34 = vld [vmem:[%s4903_s10 + $0x38] sm:$0xff] }
 0x94a   :  { %2293 = vmatmul.mubr.f32.vlgmr.msra.gmra.mrb[14].mxu1 %v2220_v41  ;;  %2364 = vmatmul.mubr.f32.vlgmr.msra.gmra.mrb[22].mxu0 %v2220_v41  ;;  %v2587_v41 = vld [vmem:[%s4903_s10 + $0x40] sm:$0xff] }
 0x94b   :  { %3631 = vmatpush3.bf16.msra.mxu1 %v3630_v40  ;;  %2884 = vmatprep.mubr.msk.f32.mxu1 %vm4150_vm8, %v4148_v18  ;;  %v3687_v40 = vpack.c.bf16 %v2586_v34, %v2585_v31  ;;  %v3690_v35 = vpack.c.bf16 %v2588_v39, %v2587_v41 }
 0x94c   :  { %3632 = vmatprep.subr.bf16.mxu1 %v4149_v6  ;;  %2919 = vmatprep.mubr.msk.f32.mxu0 %vm4150_vm8, %v4148_v18 }
 0x94d   :  { %3655 = vmatpush3.bf16.msra.mxu0 %v3654_v17 }
 0x94e   :  { %3656 = vmatprep.subr.bf16.mxu0 %v4149_v6 }
 0x94f   :  { %3634 = vmatpush3.bf16.msra.mxu1 %v3633_v38  ;;  %v2589_v38 = vld [vmem:[%s4903_s10 + $0x50] sm:$0xff] }
 0x950   :  { %3635 = vmatprep.subr.bf16.mxu1 %v4149_v6  ;;  %v3693_v51 = vpack.c.bf16 %v2590_v47, %v2589_v38 }
 0x951   :  { %3658 = vmatpush3.bf16.msra.mxu0 %v3657_v24 }
 0x952   :  { %3659 = vmatprep.subr.bf16.mxu0 %v4149_v6 }
 0x953   :  { %3637 = vmatpush3.bf16.msra.mxu1 %v3636_v52 }
 0x954   :  { %3638 = vmatprep.subr.bf16.mxu1 %v4149_v6 }
 0x955   :  { %3661 = vmatpush3.bf16.msra.mxu0 %v3660_v11  ;;  %v2591_v11 = vld [vmem:[%s4903_s10 + $0x60] sm:$0xff] }
 0x956   :  { %3662 = vmatprep.subr.bf16.mxu0 %v4149_v6 }
 0x957   :  { %3640 = vmatpush3.bf16.msra.mxu1 %v3639_v43 }
 0x958   :  { %3641 = vmatprep.subr.bf16.mxu1 %v4149_v6 }
 0x95b   :  { %3643 = vmatpush3.bf16.msra.mxu1 %v3642_v63 }
 0x95c   :  { %3644 = vmatprep.subr.bf16.mxu1 %v4149_v6 }
 0x95f   :  { %3646 = vmatpush3.bf16.msra.mxu1 %v3645_v3 }
 0x960   :  { %3647 = vmatprep.subr.bf16.mxu1 %v4149_v6 }
 0x963   :  { %3649 = vmatpush3.bf16.msra.mxu1 %v3648_v5 }
 0x964   :  { %3650 = vmatprep.subr.bf16.mxu1 %v4149_v6 }
 0x967   :  { %3652 = vmatpush3.bf16.msra.mxu1 %v3651_v13 }
 0x968   :  { %3677 = vmatprep.subr.bf16.mxu1 %v4149_v6 }
 0x96a   :  { %2885 = vmatmul.mubr.f32.vlgmr.msra.gmra.mrb[18].mxu1 %v4547_v62  ;;  %v2404_v62 = vld [vmem:[#allocation13 + $0x30] sm:$0xff] }
 0x96b   :  { %2954 = vmatprep.mubr.msk.f32.mxu1 %vm4150_vm8, %v4148_v18  ;;  %v2405_v18 = vld [vmem:[#allocation13 + $0x38] sm:$0xff]  ;;  %3679 = vmatpush3.bf16.msra.mxu1 %v3678_v61 }
 0x96c   :  { %v3663_v12 = vpack.c.bf16 %v2405_v18, %v2404_v62  ;;  %3680 = vmatprep.subr.bf16.mxu1 %v4149_v6  ;;  %v2592_v62 = vld [vmem:[%s4903_s10 + $0x68] sm:$0xff] }
 0x96d   :  { %v3696_v18 = vpack.c.bf16 %v2592_v62, %v2591_v11 }
 0x96e   :  { %3664 = vmatpush3.bf16.msra.mxu0 %v3663_v12  ;;  %v2594_v12 = vld [vmem:[%s4903_s10 + $0x78] sm:$0xff] }
 0x96f   :  { %3665 = vmatprep.subr.bf16.mxu0 %v4149_v6  ;;  %3682 = vmatpush3.bf16.msra.mxu1 %v3681_v10 }
 0x970   :  { %3683 = vmatprep.subr.bf16.mxu1 %v4149_v6 }
 0x972   :  { %3667 = vmatpush3.bf16.msra.mxu0 %v3666_v25  ;;  %v2731_v25 = vld [vmem:[%s4902_s9] ss:$0 sm:$0xff] }
 0x973   :  { %3668 = vmatprep.subr.bf16.mxu0 %v4149_v6  ;;  %3685 = vmatpush3.bf16.msra.mxu1 %v3684_v29 }
 0x974   :  { %3686 = vmatprep.subr.bf16.mxu1 %v4149_v6 }
 0x976   :  { %3670 = vmatpush3.bf16.msra.mxu0 %v3669_v33 }
 0x977   :  { %3671 = vmatprep.subr.bf16.mxu0 %v4149_v6  ;;  %3688 = vmatpush3.bf16.msra.mxu1 %v3687_v40 }
 0x978   :  { %3689 = vmatprep.subr.bf16.mxu1 %v4149_v6 }
 0x97a   :  { %3673 = vmatpush3.bf16.msra.mxu0 %v3672_v44 }
 0x97b   :  { %3674 = vmatprep.subr.bf16.mxu0 %v4149_v6  ;;  %3691 = vmatpush3.bf16.msra.mxu1 %v3690_v35 }
 0x97c   :  { %3692 = vmatprep.subr.bf16.mxu1 %v4149_v6 }
 0x97e   :  { %3676 = vmatpush3.bf16.msra.mxu0 %v3675_v49 }
 0x97f   :  { %3694 = vmatpush3.bf16.msra.mxu1 %v3693_v51 }
 0x980   :  { %3695 = vmatprep.subr.bf16.mxu1 %v4149_v6 }
 0x983   :  { %3697 = vmatpush3.bf16.msra.mxu1 %v3696_v18 }
 0x984   :  { %3698 = vmatprep.subr.bf16.mxu1 %v4149_v6  ;;  %v2732_v6 = vld [vmem:[#allocation16] ss:$0 sm:$0xff] }
 0xa1d   :  { %v2294_v52 = vpop.f32.mrb[14].mxu1  ;;  %v2365_v53 = vpop.f32.mrb[22].mxu0 }
 0xa1e   :  { %v3715_v42 = vadd.f32 %v2294_v52, %v4536_v27  ;;  %v2296_v43 = vpop.f32.mrb[15].mxu1  ;;  %v2367_v58 = vpop.f32.mrb[23].mxu0  ;;  %v3731_v1 = vadd.f32 %v2365_v53, %v4542_v54 }
 0xa1f   :  { %v3716_v59 = vadd.f32 %v2296_v43, %v4538_v30  ;;  %v3732_v3 = vadd.f32 %v2367_v58, %v4544_v55 }
 0xa20   :  { %v2728_v63 = vmul.f32 -1.442695, %v3715_v42  ;;  %v2730_v2 = vmul.f32 -1.442695, %v3731_v1 }
 0xa21   :  { %v2729_v0 = vmul.f32 -1.442695, %v3716_v59 }
 0xa22   :  { %3909 = vpow2.f32 %v2728_v63 }
 0xa23   :  { %3911 = vpow2.f32 %v2729_v0 }
 0xa24   :  { %3913 = vtanh.f32 %v3732_v3 }
 0xa25   :  { %3915 = vpow2.f32 %v2730_v2 }
 0xa2c   :  { %v3910_v4 = vpop.eup %3909 }
 0xa2d   :  { %v2383_v5 = vadd.f32 1.0, %v3910_v4  ;;  %v3912_v46 = vpop.eup %3911 }
 0xa2e   :  { %v2384_v27 = vadd.f32 1.0, %v3912_v46  ;;  %v3914_v20 = vpop.eup %3913 }
 0xa2f   :  { %3917 = vrcp.f32 %v2383_v5  ;;  %v3916_v13 = vpop.eup %3915 }
 0xa30   :  { %3919 = vrcp.f32 %v2384_v27  ;;  %v2385_v17 = vadd.f32 1.0, %v3916_v13 }
 0xa32   :  { %3921 = vrcp.f32 %v2385_v17 }
 0xa39   :  { %v3918_v30 = vpop.eup %3917 }
 0xa3a   :  { %v2394_v50 = vmul.f32 %v3918_v30, %v3914_v20  ;;  %v3920_v14 = vpop.eup %3919 }
 0xa3b   :  { %v2393_v19 = vmul.f32 %v3920_v14, %v4802_v16  ;;  %v2593_v16 = vld [vmem:[%s4903_s10 + $0x70] sm:$0xff] }
 0xa3c   :  { %v3922_v24 = vpop.eup %3921  ;;  %v3699_v21 = vpack.c.bf16 %v2594_v12, %v2593_v16 }
 0xa3d   :  { %v2496_v54 = vpop.f32.mrb[18].mxu1  ;;  %v2395_v23 = vadd.f32 %v2394_v50, %v2393_v19 }
 0xa3e   :  { %v2886_v55 = vpop.f32.mrb[19].mxu1  ;;  %3700 = vmatpush3.bf16.msra.mxu1 %v3699_v21 }
 0xa3f   :  { %3923 = vtanh.f32 %v2395_v23 }
 0xa49   :  { %v3924_v9 = vpop.eup %3923 }
 0xa4a   :  { %v2397_v7 = vmul.f32 %v3924_v9, %v3922_v24 }
 0xa4c   :  { %2920 = vmatmul.mubr.f32.vlgmr.msra.gmra.mrb[26].mxu0 %v2397_v7 }
 0xb1f   :  { %v2566_v22 = vpop.f32.mrb[26].mxu0 }
 0xb20   :  { %v2567_v26 = vadd.f32 %v2566_v22, %v2496_v54  ;;  %v2921_v32 = vpop.f32.mrb[27].mxu0 }
 0xb22   :  { %v2577_v33 = vadd.f32 %v2731_v25, %v2567_v26 }
 0xb24   :  { %v2578_v36 = vmax.f32 %v2577_v33, 0.0 }
 0xb26   :  { %2955 = vmatmul.mubr.f32.vlgmr.msra.gmra.mrb[20].mxu1 %v2578_v36 }
 0xbf9   :  { %v2668_v37 = vpop.f32.mrb[20].mxu1 }
 0xbfa   :  { %v2669_v44 = vadd.f32 %v2732_v6, %v2668_v37  ;;  %v2956_v45 = vpop.f32.mrb[21].mxu1 }
 0xbfc   :  { %2672 = vst [vmem:[%s4905_s12] sm:$0xff] %v2669_v44 }
 0xbfd   :  { %2677 = vsyncpa [#allocation4], 1 }
 0xbfe   :  { %2678 = vsyncpa [#allocation6], 1 }
 0xbff   :  { %2679 = vsyncpa [#allocation9], 1 }
 0xc00   :  { %2680 = vsyncpa [#allocation12], 1 }
 0xc01   :  { %2681 = vsyncpa [#allocation15], 1 }

</bundles_post_ra>
